<compile_context>
chip_gen: v6e
topology: v6e:2x2x1
jax: 0.10.0
libtpu: 0.0.40
codegen_flags: <defaults>
</compile_context>

<pallas_src>
import jax
import jax.numpy as jnp
import numpy as np
from jax.experimental import pallas as pl
from jax.experimental.pallas import tpu as pltpu

# EKD hyper-parameters (match the PyTorch module).
TOPK = 2000
TEMP = 0.01
ANCHOR = (10, 100, 1000, 10000, 100000, 1000000)
MOMENTUM = 0.01

LANE = 128            # TPU lane width
TK_MAX = 1024         # max feature (K) tile for the Gram kernel
LOSS_TILE_ROWS = 1024 # 1024x128 f32 = 512 KiB per input block (x3 x2 buf ~ 3 MiB)


def _round_up(x, m):
    return (x + m - 1) // m * m


def _cdiv(a, b):
    return -(-a // b)


# --------------------------------------------------------------------------
# Kernel 1: fused (student, teacher) cosine-similarity Gram, upper triangle.
# --------------------------------------------------------------------------
def _dot_t_bf16x3(a, b):
    """a @ b.T with bf16_3x (== lax.Precision.HIGH accuracy) on the MXU.

    Mosaic's in-kernel dot lowering only supports DEFAULT/HIGHEST precision;
    HIGHEST (full f32) uses ~2x the MXU passes needed here, and DEFAULT may
    drop to single-pass bf16 which TEMP=0.01 cannot tolerate.  bf16_3x keeps
    ~1e-6 relative error, safe for the ranking loss.
    """
    dn = (((1,), (1,)), ((), ()))
    a_hi = a.astype(jnp.bfloat16)
    b_hi = b.astype(jnp.bfloat16)
    a_lo = (a - a_hi.astype(jnp.float32)).astype(jnp.bfloat16)
    b_lo = (b - b_hi.astype(jnp.float32)).astype(jnp.bfloat16)
    hh = jax.lax.dot_general(a_hi, b_hi, dn, preferred_element_type=jnp.float32)
    hl = jax.lax.dot_general(a_hi, b_lo, dn, preferred_element_type=jnp.float32)
    lh = jax.lax.dot_general(a_lo, b_hi, dn, preferred_element_type=jnp.float32)
    return (hl + lh) + hh


def _gram_kernel(bi_ref, bj_ref,                       # scalar prefetch (SMEM)
                 si_ref, sj_ref, ti_ref, tj_ref,       # (GT, TK) raw features
                 isi_ref, isj_ref, iti_ref, itj_ref,   # inv-norm col/row blocks
                 os_ref, ot_ref):
    k = pl.program_id(1)

    ps = _dot_t_bf16x3(si_ref[...], sj_ref[...])
    pt = _dot_t_bf16x3(ti_ref[...], tj_ref[...])

    @pl.when(k == 0)
    def _():
        os_ref[...] = ps
        ot_ref[...] = pt

    @pl.when(k != 0)
    def _():
        os_ref[...] += ps
        ot_ref[...] += pt

    @pl.when(k == pl.num_programs(1) - 1)
    def _():
        # cosine similarity = raw dot * inv_norm_i * inv_norm_j (outer product).
        os_ref[...] *= isi_ref[...] * isj_ref[...]
        ot_ref[...] *= iti_ref[...] * itj_ref[...]


def cosine_gram_pair(g_s, g_t):
    """Returns (sim_s, sim_t), each (n_pad, n_pad) f32.

    Only tiles with block-row <= block-col are written; everything the caller
    reads (strict upper triangle of the first n rows/cols) is covered.
    """
    n = g_s.shape[0]
    gram_tile = 128 if n <= 128 else 256          # fill v6e/v7x 256-wide MXU
    n_pad = _round_up(n, gram_tile)
    nb = n_pad // gram_tile

    d = max(g_s.shape[1], g_t.shape[1])
    d_pad = _round_up(d, LANE)
    if d_pad > TK_MAX:
        d_pad = _round_up(d_pad, TK_MAX)
        tk = TK_MAX
    else:
        tk = d_pad
    k_steps = d_pad // tk

    # Per-row inverse L2 norms (torch F.normalize eps=1e-12) computed ONCE.
    inv_s = jax.lax.rsqrt(jnp.maximum(jnp.sum(g_s * g_s, axis=1), 1e-24))
    inv_t = jax.lax.rsqrt(jnp.maximum(jnp.sum(g_t * g_t, axis=1), 1e-24))

    gs = jnp.pad(g_s, ((0, n_pad - n), (0, d_pad - g_s.shape[1])))
    gt = jnp.pad(g_t, ((0, n_pad - n), (0, d_pad - g_t.shape[1])))
    inv_s = jnp.pad(inv_s, (0, n_pad - n))        # padded rows -> never read
    inv_t = jnp.pad(inv_t, (0, n_pad - n))
    inv_s_col = inv_s.reshape(n_pad, 1)
    inv_s_row = inv_s.reshape(1, n_pad)
    inv_t_col = inv_t.reshape(n_pad, 1)
    inv_t_row = inv_t.reshape(1, n_pad)

    # Static triangular tile list -> scalar-prefetch lookup tables in SMEM.
    pairs = [(i, j) for i in range(nb) for j in range(i, nb)]
    bi = jnp.asarray([p[0] for p in pairs], jnp.int32)
    bj = jnp.asarray([p[1] for p in pairs], jnp.int32)
    n_tri = len(pairs)

    feat_i = pl.BlockSpec((gram_tile, tk), lambda s, k, bi_r, bj_r: (bi_r[s], k))
    feat_j = pl.BlockSpec((gram_tile, tk), lambda s, k, bi_r, bj_r: (bj_r[s], k))
    col_i = pl.BlockSpec((gram_tile, 1), lambda s, k, bi_r, bj_r: (bi_r[s], 0))
    row_j = pl.BlockSpec((1, gram_tile), lambda s, k, bi_r, bj_r: (0, bj_r[s]))
    out_spec = pl.BlockSpec((gram_tile, gram_tile),
                            lambda s, k, bi_r, bj_r: (bi_r[s], bj_r[s]))

    sim_s, sim_t = pl.pallas_call(
        _gram_kernel,
        out_shape=(jax.ShapeDtypeStruct((n_pad, n_pad), jnp.float32),
                   jax.ShapeDtypeStruct((n_pad, n_pad), jnp.float32)),
        grid_spec=pltpu.PrefetchScalarGridSpec(
            num_scalar_prefetch=2,               # bi, bj tile tables -> SMEM
            grid=(n_tri, k_steps),               # reduction (K) axis last
            in_specs=[feat_i, feat_j, feat_i, feat_j,
                      col_i, row_j, col_i, row_j],
            out_specs=(out_spec, out_spec),
        ),
        compiler_params=pltpu.CompilerParams(
            dimension_semantics=("arbitrary", "arbitrary"),
            vmem_limit_bytes=32 * 1024 * 1024),  # ~9 MiB pipelined blocks + temps
    )(bi, bj, gs, gs, gt, gt, inv_s_col, inv_s_row, inv_t_col, inv_t_row)
    return sim_s, sim_t


# --------------------------------------------------------------------------
# Kernel 2: fused weighted rank-count MSE (both relative_loss calls at once).
# --------------------------------------------------------------------------
def _rank_mse_kernel(s_anchor_ref, t_anchor_ref, s_ref, t_ref, w_ref,
                     o_ref, acc_ref):
    step = pl.program_id(1)

    @pl.when(step == 0)
    def _():
        acc_ref[...] = jnp.zeros_like(acc_ref)

    s = s_ref[...]                               # (tile, 128) f32
    t = t_ref[...]
    w = w_ref[...]
    # sigmoid(z/T) = 0.5 + 0.5*tanh(z/(2T)); the constant 0.5 offsets cancel in
    # rank_count_s - rank_count_t, so only 12 EUP tanh per element remain
    # (vs 24 exp+reciprocal plus clips for the literal form).
    half_inv_temp = jnp.float32(0.5 / TEMP)
    ts = jnp.zeros_like(s)
    tt = jnp.zeros_like(t)
    for a in range(len(ANCHOR)):                 # 6 anchors, fully unrolled
        ts = ts + jnp.tanh((s - s_anchor_ref[a]) * half_inv_temp)
        tt = tt + jnp.tanh((t - t_anchor_ref[a]) * half_inv_temp)
    d = jnp.float32(0.5) * (ts - tt)             # rank_count_s - rank_count_t
    contrib = w * d * d
    # vreg-shaped accumulation: pure VPU adds, cross-lane reduce done once in JAX.
    acc_ref[...] += jnp.sum(contrib.reshape(-1, 8, LANE), axis=0)

    @pl.when(step == pl.num_programs(1) - 1)
    def _():
        o_ref[...] = acc_ref[...]


def weighted_rank_mse(s_vals, t_vals, weights, s_anchor, t_anchor):
    """sum_i w_i * (rank_count(s_i) - rank_count(t_i))**2 via Pallas."""
    n = s_vals.shape[0]
    rows_needed = _round_up(max(_cdiv(n, LANE), 1), 8)
    # Two grid-parallel slices whenever there is enough data: uses both v7x
    # TensorCores; on single-TC chips it is just a 2-long serial outer axis.
    ncores = 2 if rows_needed >= 16 else 1
    # Size the tile to the data (don't round rows up to a fixed 512/1024 tile).
    tile = min(LOSS_TILE_ROWS, _round_up(_cdiv(rows_needed, ncores), 8))
    rows = _round_up(rows_needed, ncores * tile)
    steps = rows // (ncores * tile)
    pad = rows * LANE - n
    if pad:
        z = jnp.zeros((pad,), jnp.float32)       # zero weight => contributes 0
        s_vals = jnp.concatenate([s_vals, z])
        t_vals = jnp.concatenate([t_vals, z])
        weights = jnp.concatenate([weights, z])
    s2 = s_vals.reshape(rows, LANE)
    t2 = t_vals.reshape(rows, LANE)
    w2 = weights.reshape(rows, LANE)

    def data_idx(c, i, s_anc, t_anc):            # scalar-prefetch refs unused
        return (c * steps + i, 0)

    partial = pl.pallas_call(
        _rank_mse_kernel,
        out_shape=jax.ShapeDtypeStruct((ncores * 8, LANE), jnp.float32),
        grid_spec=pltpu.PrefetchScalarGridSpec(
            num_scalar_prefetch=2,               # s_anchor, t_anchor -> SMEM
            grid=(ncores, steps),
            in_specs=[
                pl.BlockSpec((tile, LANE), data_idx),
                pl.BlockSpec((tile, LANE), data_idx),
                pl.BlockSpec((tile, LANE), data_idx),
            ],
            out_specs=pl.BlockSpec((8, LANE), lambda c, i, s_anc, t_anc: (c, 0)),
            scratch_shapes=[pltpu.VMEM((8, LANE), jnp.float32)],
        ),
        compiler_params=pltpu.CompilerParams(
            dimension_semantics=("parallel", "arbitrary")),
    )(s_anchor.astype(jnp.float32), t_anchor.astype(jnp.float32), s2, t2, w2)
    return jnp.sum(partial)


# --------------------------------------------------------------------------
# EKD forward (functional: anchors are explicit state in/out).
# --------------------------------------------------------------------------
@jax.jit
def ekd_forward(g_s, g_t, labels, s_anchor, t_anchor):
    """Returns (loss, new_s_anchor, new_t_anchor).

    The PyTorch module mutates its registered buffers inside forward; here the
    EMA-updated anchors are returned as extra outputs.
    """
    n = labels.shape[0]
    gs2 = g_s.reshape(n, -1).astype(jnp.float32)
    gt2 = g_t.reshape(n, -1).astype(jnp.float32)

    sim_s, sim_t = cosine_gram_pair(gs2, gt2)

    # Strict-upper-triangle pairs (static index set, matches triu(.,1) mask).
    # TODO(synk): for very large batches, emit a lane-dense masked pair slab
    # directly from the Gram kernel instead of the full matrix + triu gather.
    iu_r, iu_c = jnp.triu_indices(n, k=1)
    s_pairs = sim_s[iu_r, iu_c]
    t_pairs = sim_t[iu_r, iu_c]
    eq = labels[iu_r] == labels[iu_c]
    num_pairs = s_pairs.shape[0]
    num_pos = jnp.sum(eq.astype(jnp.int32))
    num_neg = jnp.int32(num_pairs) - num_pos

    neg_s = jnp.where(eq, -jnp.inf, s_pairs)
    neg_t = jnp.where(eq, -jnp.inf, t_pairs)

    # TODO(synk): no Pallas sort primitive on TPU; the descending sort / top-k
    # of negative pairs stays in XLA (jnp.argsort / jnp.sort).
    order = jnp.argsort(-neg_s)                  # student negatives, descending
    sorted_s_neg = neg_s[order]
    sorted_t_neg = -jnp.sort(-neg_t)             # teacher negatives, descending

    # Anchor EMA update (the torch.no_grad() block).  Clamp guards the
    # degenerate case num_neg < anchor (torch would index/crash there).
    thr_idx = num_neg // jnp.asarray(ANCHOR, dtype=jnp.int32)
    thr_idx = jnp.minimum(thr_idx, jnp.maximum(num_neg - 1, 0))
    s_anchor_new = jax.lax.stop_gradient(
        MOMENTUM * jnp.take(sorted_s_neg, thr_idx) + (1.0 - MOMENTUM) * s_anchor)
    t_anchor_new = jax.lax.stop_gradient(
        MOMENTUM * jnp.take(sorted_t_neg, thr_idx) + (1.0 - MOMENTUM) * t_anchor)

    # Top-k hardest student negatives + teacher values at the same pairs.
    k = min(TOPK, num_pairs)
    top_idx = order[:k]
    valid_neg = jnp.arange(k) < num_neg
    s_sel = jnp.where(valid_neg, s_pairs[top_idx], 0.0)
    t_sel = jnp.where(valid_neg, t_pairs[top_idx], 0.0)
    neg_count = jnp.minimum(num_neg, k)

    # Fold the MSE means and the 0.02 / 0.01 coefficients into per-element
    # weights so one kernel launch produces the final scalar loss.
    pos_w = eq.astype(jnp.float32) * (
        jnp.float32(0.02) / jnp.maximum(num_pos, 1).astype(jnp.float32))
    neg_w = valid_neg.astype(jnp.float32) * (
        jnp.float32(0.01) / jnp.maximum(neg_count, 1).astype(jnp.float32))

    data_s = jnp.concatenate([s_pairs, s_sel])
    data_t = jnp.concatenate([t_pairs, t_sel])
    data_w = jnp.concatenate([pos_w, neg_w])

    loss = weighted_rank_mse(data_s, data_t, data_w, s_anchor_new, t_anchor_new)
    return loss, s_anchor_new, t_anchor_new


# --------------------------------------------------------------------------
# Pure-numpy reference mirroring the PyTorch module (float64).
# --------------------------------------------------------------------------
def _ekd_reference_numpy(g_s, g_t, labels, s_anchor, t_anchor):
    n = labels.shape[0]
    g_s = np.asarray(g_s, np.float64).reshape(n, -1)
    g_t = np.asarray(g_t, np.float64).reshape(n, -1)
    labels = np.asarray(labels)
    s_anchor = np.asarray(s_anchor, np.float64).copy()
    t_anchor = np.asarray(t_anchor, np.float64).copy()

    def normalize(x):
        nrm = np.sqrt((x * x).sum(axis=1, keepdims=True))
        return x / np.maximum(nrm, 1e-12)

    sim_s = normalize(g_s) @ normalize(g_s).T
    sim_t = normalize(g_t) @ normalize(g_t).T
    eq = labels[None, :] == labels[:, None]
    iu = np.triu_indices(n, 1)
    s, t = sim_s[iu], sim_t[iu]
    pos, neg = eq[iu], ~eq[iu]
    pos_s, pos_t = s[pos], t[pos]
    neg_s, neg_t = s[neg], t[neg]

    order = np.argsort(-neg_s, kind="stable")
    sorted_s_neg = neg_s[order]
    sorted_t_neg = np.sort(neg_t)[::-1]
    length = neg_s.shape[0]
    sel = [length // a for a in ANCHOR]
    s_anchor = MOMENTUM * sorted_s_neg[sel] + (1.0 - MOMENTUM) * s_anchor
    t_anchor = MOMENTUM * sorted_t_neg[sel] + (1.0 - MOMENTUM) * t_anchor

    def sigmoid(x):
        return 1.0 / (1.0 + np.exp(np.clip(-x / TEMP, -50.0, 50.0)))

    def relative_loss(sv, tv):
        s_rank = sigmoid(sv[:, None] - s_anchor[None, :]).sum(axis=1)
        t_rank = sigmoid(tv[:, None] - t_anchor[None, :]).sum(axis=1)
        return np.mean((s_rank - t_rank) ** 2)

    pos_loss = relative_loss(pos_s, pos_t)
    sel_idx = order[:TOPK]
    neg_loss = relative_loss(neg_s[sel_idx], neg_t[sel_idx])
    return pos_loss * 0.02 + neg_loss * 0.01, s_anchor, t_anchor


if __name__ == "__main__":
    key = jax.random.PRNGKey(0)
    batch, feat = 16, 32
    k_s, k_t = jax.random.split(key)
    g_s = jax.random.normal(k_s, (batch, feat), dtype=jnp.float32)
    g_t = jax.random.normal(k_t, (batch, feat), dtype=jnp.float32)
    labels = jnp.arange(batch, dtype=jnp.int32) % 5   # both pos and neg pairs
    s_anchor0 = jnp.zeros((len(ANCHOR),), jnp.float32)  # fresh-module buffers
    t_anchor0 = jnp.zeros((len(ANCHOR),), jnp.float32)

    loss, s_anchor1, t_anchor1 = ekd_forward(g_s, g_t, labels,
                                             s_anchor0, t_anchor0)
    loss = jax.block_until_ready(loss)

    ref_loss, ref_sa, ref_ta = _ekd_reference_numpy(
        np.asarray(g_s), np.asarray(g_t), np.asarray(labels),
        np.zeros(len(ANCHOR)), np.zeros(len(ANCHOR)))

    assert np.isfinite(float(loss)), loss
    assert abs(float(loss) - float(ref_loss)) <= 1e-3 + 1e-3 * abs(float(ref_loss)), \
        (float(loss), float(ref_loss))
    assert np.allclose(np.asarray(s_anchor1), ref_sa, rtol=1e-4, atol=1e-5), \
        (s_anchor1, ref_sa)
    assert np.allclose(np.asarray(t_anchor1), ref_ta, rtol=1e-4, atol=1e-5), \
        (t_anchor1, ref_ta)
    print("KERNEL_OK")
</pallas_src>

<mosaic_0001>
module attributes {stable_mosaic.version = 11 : i64} {
  func.func private @main(%arg0: i32) attributes {dimension_semantics = [#tpu.dimension_semantics<core_parallel>], iteration_bounds = array<i64: 2>, tpu.core_type = #tpu.core_type<sc_scalar_subcore>, window_params = []} {
    return
  }
}

module attributes {stable_mosaic.version = 11 : i64} {
  func.func private @main(%arg0: i32) attributes {dimension_semantics = [#tpu.dimension_semantics<core_parallel>], iteration_bounds = array<i64: 2>, tpu.core_type = #tpu.core_type<sc_scalar_subcore>, window_params = []} {
    return
  }
}

module attributes {stable_mosaic.version = 11 : i64} {
  func.func @_gram_kernel(%arg0: i32, %arg1: i32, %arg2: memref<1xi32, #tpu.memory_space<smem>>, %arg3: memref<1xi32, #tpu.memory_space<smem>>, %arg4: memref<128x128xf32, #tpu.memory_space<vmem>>, %arg5: memref<128x128xf32, #tpu.memory_space<vmem>>, %arg6: memref<128x128xf32, #tpu.memory_space<vmem>>, %arg7: memref<128x128xf32, #tpu.memory_space<vmem>>, %arg8: memref<128x1xf32, #tpu.memory_space<vmem>>, %arg9: memref<1x128xf32, #tpu.memory_space<vmem>>, %arg10: memref<128x1xf32, #tpu.memory_space<vmem>>, %arg11: memref<1x128xf32, #tpu.memory_space<vmem>>, %arg12: memref<128x128xf32, #tpu.memory_space<vmem>>, %arg13: memref<128x128xf32, #tpu.memory_space<vmem>>) attributes {dimension_semantics = [#tpu.dimension_semantics<arbitrary>, #tpu.dimension_semantics<arbitrary>], iteration_bounds = array<i64: 1, 1>, scalar_prefetch = 2 : i64, scratch_operands = 0 : i64, tpu.core_type = #tpu.core_type<tc>, window_params = [{transform_indices = @transform_0, window_bounds = array<i64: 128, 128>}, {transform_indices = @transform_1, window_bounds = array<i64: 128, 128>}, {transform_indices = @transform_2, window_bounds = array<i64: 128, 128>}, {transform_indices = @transform_3, window_bounds = array<i64: 128, 128>}, {transform_indices = @transform_4, window_bounds = array<i64: 128, 1>}, {transform_indices = @transform_5, window_bounds = array<i64: 1, 128>}, {transform_indices = @transform_6, window_bounds = array<i64: 128, 1>}, {transform_indices = @transform_7, window_bounds = array<i64: 1, 128>}, {transform_indices = @transform_8, window_bounds = array<i64: 128, 128>}, {transform_indices = @transform_9, window_bounds = array<i64: 128, 128>}]} {
    %c0 = arith.constant 0 : index
    %c0_0 = arith.constant 0 : index
    %0 = vector.load %arg4[%c0, %c0_0] : memref<128x128xf32, #tpu.memory_space<vmem>>, vector<128x128xf32>
    %c0_1 = arith.constant 0 : index
    %c0_2 = arith.constant 0 : index
    %1 = vector.load %arg5[%c0_1, %c0_2] : memref<128x128xf32, #tpu.memory_space<vmem>>, vector<128x128xf32>
    %2 = arith.truncf %0 : vector<128x128xf32> to vector<128x128xbf16>
    %3 = arith.truncf %1 : vector<128x128xf32> to vector<128x128xbf16>
    %4 = arith.extf %2 : vector<128x128xbf16> to vector<128x128xf32>
    %5 = arith.subf %0, %4 : vector<128x128xf32>
    %6 = arith.truncf %5 : vector<128x128xf32> to vector<128x128xbf16>
    %7 = arith.extf %3 : vector<128x128xbf16> to vector<128x128xf32>
    %8 = arith.subf %1, %7 : vector<128x128xf32>
    %9 = arith.truncf %8 : vector<128x128xf32> to vector<128x128xbf16>
    %cst = arith.constant dense<0.000000e+00> : vector<128x128xf32>
    %10 = tpu.matmul %2, %3, %cst {dimension_numbers = #tpu.dot_dimension_numbers<[1], [1], [0], [0], [0, 0, 1, 0], [], []>} : vector<128x128xbf16>, vector<128x128xbf16>, vector<128x128xf32> -> vector<128x128xf32>
    %cst_3 = arith.constant dense<0.000000e+00> : vector<128x128xf32>
    %11 = tpu.matmul %2, %9, %cst_3 {dimension_numbers = #tpu.dot_dimension_numbers<[1], [1], [0], [0], [0, 0, 1, 0], [], []>} : vector<128x128xbf16>, vector<128x128xbf16>, vector<128x128xf32> -> vector<128x128xf32>
    %cst_4 = arith.constant dense<0.000000e+00> : vector<128x128xf32>
    %12 = tpu.matmul %6, %3, %cst_4 {dimension_numbers = #tpu.dot_dimension_numbers<[1], [1], [0], [0], [0, 0, 1, 0], [], []>} : vector<128x128xbf16>, vector<128x128xbf16>, vector<128x128xf32> -> vector<128x128xf32>
    %13 = arith.addf %11, %12 : vector<128x128xf32>
    %14 = arith.addf %13, %10 : vector<128x128xf32>
    %c0_5 = arith.constant 0 : index
    %c0_6 = arith.constant 0 : index
    %15 = vector.load %arg6[%c0_5, %c0_6] : memref<128x128xf32, #tpu.memory_space<vmem>>, vector<128x128xf32>
    %c0_7 = arith.constant 0 : index
    %c0_8 = arith.constant 0 : index
    %16 = vector.load %arg7[%c0_7, %c0_8] : memref<128x128xf32, #tpu.memory_space<vmem>>, vector<128x128xf32>
    %17 = arith.truncf %15 : vector<128x128xf32> to vector<128x128xbf16>
    %18 = arith.truncf %16 : vector<128x128xf32> to vector<128x128xbf16>
    %19 = arith.extf %17 : vector<128x128xbf16> to vector<128x128xf32>
    %20 = arith.subf %15, %19 : vector<128x128xf32>
    %21 = arith.truncf %20 : vector<128x128xf32> to vector<128x128xbf16>
    %22 = arith.extf %18 : vector<128x128xbf16> to vector<128x128xf32>
    %23 = arith.subf %16, %22 : vector<128x128xf32>
    %24 = arith.truncf %23 : vector<128x128xf32> to vector<128x128xbf16>
    %cst_9 = arith.constant dense<0.000000e+00> : vector<128x128xf32>
    %25 = tpu.matmul %17, %18, %cst_9 {dimension_numbers = #tpu.dot_dimension_numbers<[1], [1], [0], [0], [0, 0, 1, 0], [], []>} : vector<128x128xbf16>, vector<128x128xbf16>, vector<128x128xf32> -> vector<128x128xf32>
    %cst_10 = arith.constant dense<0.000000e+00> : vector<128x128xf32>
    %26 = tpu.matmul %17, %24, %cst_10 {dimension_numbers = #tpu.dot_dimension_numbers<[1], [1], [0], [0], [0, 0, 1, 0], [], []>} : vector<128x128xbf16>, vector<128x128xbf16>, vector<128x128xf32> -> vector<128x128xf32>
    %cst_11 = arith.constant dense<0.000000e+00> : vector<128x128xf32>
    %27 = tpu.matmul %21, %18, %cst_11 {dimension_numbers = #tpu.dot_dimension_numbers<[1], [1], [0], [0], [0, 0, 1, 0], [], []>} : vector<128x128xbf16>, vector<128x128xbf16>, vector<128x128xf32> -> vector<128x128xf32>
    %28 = arith.addf %26, %27 : vector<128x128xf32>
    %29 = arith.addf %28, %25 : vector<128x128xf32>
    %c0_i32 = arith.constant 0 : i32
    %30 = arith.cmpi eq, %arg1, %c0_i32 : i32
    %31 = arith.extui %30 : i1 to i32
    %c0_i32_12 = arith.constant 0 : i32
    %32 = arith.cmpi ne, %31, %c0_i32_12 : i32
    scf.if %32 {
      %c0_17 = arith.constant 0 : index
      %c0_18 = arith.constant 0 : index
      %39 = vector.load %arg12[%c0_17, %c0_18] : memref<128x128xf32, #tpu.memory_space<vmem>>, vector<128x128xf32>
      tpu.vector_store %arg12[%c0_17, %c0_18], %14 {strides = array<i32>} : memref<128x128xf32, #tpu.memory_space<vmem>>, vector<128x128xf32>,
      %c0_19 = arith.constant 0 : index
      %c0_20 = arith.constant 0 : index
      %40 = vector.load %arg13[%c0_19, %c0_20] : memref<128x128xf32, #tpu.memory_space<vmem>>, vector<128x128xf32>
      tpu.vector_store %arg13[%c0_19, %c0_20], %29 {strides = array<i32>} : memref<128x128xf32, #tpu.memory_space<vmem>>, vector<128x128xf32>,
    } else {
    }
    %c0_i32_13 = arith.constant 0 : i32
    %33 = arith.cmpi ne, %arg1, %c0_i32_13 : i32
    %34 = arith.extui %33 : i1 to i32
    %c0_i32_14 = arith.constant 0 : i32
    %35 = arith.cmpi ne, %34, %c0_i32_14 : i32
    scf.if %35 {
      %c0_17 = arith.constant 0 : index
      %c0_18 = arith.constant 0 : index
      %39 = vector.load %arg12[%c0_17, %c0_18] : memref<128x128xf32, #tpu.memory_space<vmem>>, vector<128x128xf32>
      %40 = arith.addf %39, %14 : vector<128x128xf32>
      %c0_19 = arith.constant 0 : index
      %c0_20 = arith.constant 0 : index
      %41 = vector.load %arg12[%c0_19, %c0_20] : memref<128x128xf32, #tpu.memory_space<vmem>>, vector<128x128xf32>
      tpu.vector_store %arg12[%c0_19, %c0_20], %40 {strides = array<i32>} : memref<128x128xf32, #tpu.memory_space<vmem>>, vector<128x128xf32>,
      %c0_21 = arith.constant 0 : index
      %c0_22 = arith.constant 0 : index
      %42 = vector.load %arg13[%c0_21, %c0_22] : memref<128x128xf32, #tpu.memory_space<vmem>>, vector<128x128xf32>
      %43 = arith.addf %42, %29 : vector<128x128xf32>
      %c0_23 = arith.constant 0 : index
      %c0_24 = arith.constant 0 : index
      %44 = vector.load %arg13[%c0_23, %c0_24] : memref<128x128xf32, #tpu.memory_space<vmem>>, vector<128x128xf32>
      tpu.vector_store %arg13[%c0_23, %c0_24], %43 {strides = array<i32>} : memref<128x128xf32, #tpu.memory_space<vmem>>, vector<128x128xf32>,
    } else {
    }
    %c0_i32_15 = arith.constant 0 : i32
    %36 = arith.cmpi eq, %arg1, %c0_i32_15 : i32
    %37 = arith.extui %36 : i1 to i32
    %c0_i32_16 = arith.constant 0 : i32
    %38 = arith.cmpi ne, %37, %c0_i32_16 : i32
    scf.if %38 {
      %c0_17 = arith.constant 0 : index
      %c0_18 = arith.constant 0 : index
      %39 = vector.load %arg12[%c0_17, %c0_18] : memref<128x128xf32, #tpu.memory_space<vmem>>, vector<128x128xf32>
      %c0_19 = arith.constant 0 : index
      %c0_20 = arith.constant 0 : index
      %40 = vector.load %arg8[%c0_19, %c0_20] : memref<128x1xf32, #tpu.memory_space<vmem>>, vector<128x1xf32>
      %c0_21 = arith.constant 0 : index
      %c0_22 = arith.constant 0 : index
      %41 = vector.load %arg9[%c0_21, %c0_22] : memref<1x128xf32, #tpu.memory_space<vmem>>, vector<1x128xf32>
      %42 = vector.broadcast %40 : vector<128x1xf32> to vector<128x128xf32>
      %43 = vector.broadcast %41 : vector<1x128xf32> to vector<128x128xf32>
      %44 = arith.mulf %42, %43 : vector<128x128xf32>
      %45 = arith.mulf %39, %44 : vector<128x128xf32>
      %c0_23 = arith.constant 0 : index
      %c0_24 = arith.constant 0 : index
      %46 = vector.load %arg12[%c0_23, %c0_24] : memref<128x128xf32, #tpu.memory_space<vmem>>, vector<128x128xf32>
      tpu.vector_store %arg12[%c0_23, %c0_24], %45 {strides = array<i32>} : memref<128x128xf32, #tpu.memory_space<vmem>>, vector<128x128xf32>,
      %c0_25 = arith.constant 0 : index
      %c0_26 = arith.constant 0 : index
      %47 = vector.load %arg13[%c0_25, %c0_26] : memref<128x128xf32, #tpu.memory_space<vmem>>, vector<128x128xf32>
      %c0_27 = arith.constant 0 : index
      %c0_28 = arith.constant 0 : index
      %48 = vector.load %arg10[%c0_27, %c0_28] : memref<128x1xf32, #tpu.memory_space<vmem>>, vector<128x1xf32>
      %c0_29 = arith.constant 0 : index
      %c0_30 = arith.constant 0 : index
      %49 = vector.load %arg11[%c0_29, %c0_30] : memref<1x128xf32, #tpu.memory_space<vmem>>, vector<1x128xf32>
      %50 = vector.broadcast %48 : vector<128x1xf32> to vector<128x128xf32>
      %51 = vector.broadcast %49 : vector<1x128xf32> to vector<128x128xf32>
      %52 = arith.mulf %50, %51 : vector<128x128xf32>
      %53 = arith.mulf %47, %52 : vector<128x128xf32>
      %c0_31 = arith.constant 0 : index
      %c0_32 = arith.constant 0 : index
      %54 = vector.load %arg13[%c0_31, %c0_32] : memref<128x128xf32, #tpu.memory_space<vmem>>, vector<128x128xf32>
      tpu.vector_store %arg13[%c0_31, %c0_32], %53 {strides = array<i32>} : memref<128x128xf32, #tpu.memory_space<vmem>>, vector<128x128xf32>,
    } else {
    }
    return
  }
  func.func @transform_0(%arg0: i32, %arg1: i32, %arg2: memref<1xi32, #tpu.memory_space<smem>>, %arg3: memref<1xi32, #tpu.memory_space<smem>>) -> (i32, i32) {
    %0 = arith.index_cast %arg0 : i32 to index
    %1 = memref.load %arg2[%0] : memref<1xi32, #tpu.memory_space<smem>>
    %c0_i32 = arith.constant 0 : i32
    return %1, %arg1 : i32, i32
  }
  func.func @transform_1(%arg0: i32, %arg1: i32, %arg2: memref<1xi32, #tpu.memory_space<smem>>, %arg3: memref<1xi32, #tpu.memory_space<smem>>) -> (i32, i32) {
    %0 = arith.index_cast %arg0 : i32 to index
    %1 = memref.load %arg3[%0] : memref<1xi32, #tpu.memory_space<smem>>
    %c0_i32 = arith.constant 0 : i32
    return %1, %arg1 : i32, i32
  }
  func.func @transform_2(%arg0: i32, %arg1: i32, %arg2: memref<1xi32, #tpu.memory_space<smem>>, %arg3: memref<1xi32, #tpu.memory_space<smem>>) -> (i32, i32) {
    %0 = arith.index_cast %arg0 : i32 to index
    %1 = memref.load %arg2[%0] : memref<1xi32, #tpu.memory_space<smem>>
    %c0_i32 = arith.constant 0 : i32
    return %1, %arg1 : i32, i32
  }
  func.func @transform_3(%arg0: i32, %arg1: i32, %arg2: memref<1xi32, #tpu.memory_space<smem>>, %arg3: memref<1xi32, #tpu.memory_space<smem>>) -> (i32, i32) {
    %0 = arith.index_cast %arg0 : i32 to index
    %1 = memref.load %arg3[%0] : memref<1xi32, #tpu.memory_space<smem>>
    %c0_i32 = arith.constant 0 : i32
    return %1, %arg1 : i32, i32
  }
  func.func @transform_4(%arg0: i32, %arg1: i32, %arg2: memref<1xi32, #tpu.memory_space<smem>>, %arg3: memref<1xi32, #tpu.memory_space<smem>>) -> (i32, i32) {
    %0 = arith.index_cast %arg0 : i32 to index
    %1 = memref.load %arg2[%0] : memref<1xi32, #tpu.memory_space<smem>>
    %c0_i32 = arith.constant 0 : i32
    %c0_i32_0 = arith.constant 0 : i32
    return %1, %c0_i32 : i32, i32
  }
  func.func @transform_5(%arg0: i32, %arg1: i32, %arg2: memref<1xi32, #tpu.memory_space<smem>>, %arg3: memref<1xi32, #tpu.memory_space<smem>>) -> (i32, i32) {
    %0 = arith.index_cast %arg0 : i32 to index
    %1 = memref.load %arg3[%0] : memref<1xi32, #tpu.memory_space<smem>>
    %c0_i32 = arith.constant 0 : i32
    %c0_i32_0 = arith.constant 0 : i32
    return %c0_i32, %1 : i32, i32
  }
  func.func @transform_6(%arg0: i32, %arg1: i32, %arg2: memref<1xi32, #tpu.memory_space<smem>>, %arg3: memref<1xi32, #tpu.memory_space<smem>>) -> (i32, i32) {
    %0 = arith.index_cast %arg0 : i32 to index
    %1 = memref.load %arg2[%0] : memref<1xi32, #tpu.memory_space<smem>>
    %c0_i32 = arith.constant 0 : i32
    %c0_i32_0 = arith.constant 0 : i32
    return %1, %c0_i32 : i32, i32
  }
  func.func @transform_7(%arg0: i32, %arg1: i32, %arg2: memref<1xi32, #tpu.memory_space<smem>>, %arg3: memref<1xi32, #tpu.memory_space<smem>>) -> (i32, i32) {
    %0 = arith.index_cast %arg0 : i32 to index
    %1 = memref.load %arg3[%0] : memref<1xi32, #tpu.memory_space<smem>>
    %c0_i32 = arith.constant 0 : i32
    %c0_i32_0 = arith.constant 0 : i32
    return %c0_i32, %1 : i32, i32
  }
  func.func @transform_8(%arg0: i32, %arg1: i32, %arg2: memref<1xi32, #tpu.memory_space<smem>>, %arg3: memref<1xi32, #tpu.memory_space<smem>>) -> (i32, i32) {
    %0 = arith.index_cast %arg0 : i32 to index
    %1 = memref.load %arg2[%0] : memref<1xi32, #tpu.memory_space<smem>>
    %2 = arith.index_cast %arg0 : i32 to index
    %3 = memref.load %arg3[%2] : memref<1xi32, #tpu.memory_space<smem>>
    %c0_i32 = arith.constant 0 : i32
    return %1, %3 : i32, i32
  }
  func.func @transform_9(%arg0: i32, %arg1: i32, %arg2: memref<1xi32, #tpu.memory_space<smem>>, %arg3: memref<1xi32, #tpu.memory_space<smem>>) -> (i32, i32) {
    %0 = arith.index_cast %arg0 : i32 to index
    %1 = memref.load %arg2[%0] : memref<1xi32, #tpu.memory_space<smem>>
    %2 = arith.index_cast %arg0 : i32 to index
    %3 = memref.load %arg3[%2] : memref<1xi32, #tpu.memory_space<smem>>
    %c0_i32 = arith.constant 0 : i32
    return %1, %3 : i32, i32
  }
}

module attributes {stable_mosaic.version = 11 : i64} {
  func.func @_rank_mse_kernel(%arg0: i32, %arg1: i32, %arg2: memref<6xf32, #tpu.memory_space<smem>>, %arg3: memref<6xf32, #tpu.memory_space<smem>>, %arg4: memref<8x128xf32, #tpu.memory_space<vmem>>, %arg5: memref<8x128xf32, #tpu.memory_space<vmem>>, %arg6: memref<8x128xf32, #tpu.memory_space<vmem>>, %arg7: memref<8x128xf32, #tpu.memory_space<vmem>>, %arg8: memref<8x128xf32, #tpu.memory_space<vmem>>) attributes {dimension_semantics = [#tpu.dimension_semantics<parallel>, #tpu.dimension_semantics<arbitrary>], iteration_bounds = array<i64: 1, 1>, scalar_prefetch = 2 : i64, scratch_operands = 1 : i64, tpu.core_type = #tpu.core_type<tc>, window_params = [{transform_indices = @transform_0, window_bounds = array<i64: 8, 128>}, {transform_indices = @transform_1, window_bounds = array<i64: 8, 128>}, {transform_indices = @transform_2, window_bounds = array<i64: 8, 128>}, {transform_indices = @transform_3, window_bounds = array<i64: 8, 128>}]} {
    %c0_i32 = arith.constant 0 : i32
    %0 = arith.cmpi eq, %arg1, %c0_i32 : i32
    %1 = arith.extui %0 : i1 to i32
    %c0_i32_0 = arith.constant 0 : i32
    %2 = arith.cmpi ne, %1, %c0_i32_0 : i32
    scf.if %2 {
      %cst_34 = arith.constant 0.000000e+00 : f32
      %105 = vector.broadcast %cst_34 : f32 to vector<8x128xf32>
      %c0_35 = arith.constant 0 : index
      %c0_36 = arith.constant 0 : index
      %106 = vector.load %arg8[%c0_35, %c0_36] : memref<8x128xf32, #tpu.memory_space<vmem>>, vector<8x128xf32>
      tpu.vector_store %arg8[%c0_35, %c0_36], %105 {strides = array<i32>} : memref<8x128xf32, #tpu.memory_space<vmem>>, vector<8x128xf32>,
    } else {
    }
    %c0 = arith.constant 0 : index
    %c0_1 = arith.constant 0 : index
    %3 = vector.load %arg4[%c0, %c0_1] : memref<8x128xf32, #tpu.memory_space<vmem>>, vector<8x128xf32>
    %c0_2 = arith.constant 0 : index
    %c0_3 = arith.constant 0 : index
    %4 = vector.load %arg5[%c0_2, %c0_3] : memref<8x128xf32, #tpu.memory_space<vmem>>, vector<8x128xf32>
    %c0_4 = arith.constant 0 : index
    %c0_5 = arith.constant 0 : index
    %5 = vector.load %arg6[%c0_4, %c0_5] : memref<8x128xf32, #tpu.memory_space<vmem>>, vector<8x128xf32>
    %cst = arith.constant 0.000000e+00 : f32
    %6 = vector.broadcast %cst : f32 to vector<8x128xf32>
    %cst_6 = arith.constant 0.000000e+00 : f32
    %7 = vector.broadcast %cst_6 : f32 to vector<8x128xf32>
    %c0_7 = arith.constant 0 : index
    %8 = memref.load %arg2[%c0_7] : memref<6xf32, #tpu.memory_space<smem>>
    %9 = vector.broadcast %8 : f32 to vector<8x128xf32>
    %10 = arith.subf %3, %9 : vector<8x128xf32>
    %cst_8 = arith.constant 5.000000e+01 : f32
    %11 = vector.broadcast %cst_8 : f32 to vector<8x128xf32>
    %12 = arith.mulf %10, %11 : vector<8x128xf32>
    %13 = math.tanh %12 : vector<8x128xf32>
    %14 = arith.addf %6, %13 : vector<8x128xf32>
    %c0_9 = arith.constant 0 : index
    %15 = memref.load %arg3[%c0_9] : memref<6xf32, #tpu.memory_space<smem>>
    %16 = vector.broadcast %15 : f32 to vector<8x128xf32>
    %17 = arith.subf %4, %16 : vector<8x128xf32>
    %cst_10 = arith.constant 5.000000e+01 : f32
    %18 = vector.broadcast %cst_10 : f32 to vector<8x128xf32>
    %19 = arith.mulf %17, %18 : vector<8x128xf32>
    %20 = math.tanh %19 : vector<8x128xf32>
    %21 = arith.addf %7, %20 : vector<8x128xf32>
    %c1 = arith.constant 1 : index
    %22 = memref.load %arg2[%c1] : memref<6xf32, #tpu.memory_space<smem>>
    %23 = vector.broadcast %22 : f32 to vector<8x128xf32>
    %24 = arith.subf %3, %23 : vector<8x128xf32>
    %cst_11 = arith.constant 5.000000e+01 : f32
    %25 = vector.broadcast %cst_11 : f32 to vector<8x128xf32>
    %26 = arith.mulf %24, %25 : vector<8x128xf32>
    %27 = math.tanh %26 : vector<8x128xf32>
    %28 = arith.addf %14, %27 : vector<8x128xf32>
    %c1_12 = arith.constant 1 : index
    %29 = memref.load %arg3[%c1_12] : memref<6xf32, #tpu.memory_space<smem>>
    %30 = vector.broadcast %29 : f32 to vector<8x128xf32>
    %31 = arith.subf %4, %30 : vector<8x128xf32>
    %cst_13 = arith.constant 5.000000e+01 : f32
    %32 = vector.broadcast %cst_13 : f32 to vector<8x128xf32>
    %33 = arith.mulf %31, %32 : vector<8x128xf32>
    %34 = math.tanh %33 : vector<8x128xf32>
    %35 = arith.addf %21, %34 : vector<8x128xf32>
    %c2 = arith.constant 2 : index
    %36 = memref.load %arg2[%c2] : memref<6xf32, #tpu.memory_space<smem>>
    %37 = vector.broadcast %36 : f32 to vector<8x128xf32>
    %38 = arith.subf %3, %37 : vector<8x128xf32>
    %cst_14 = arith.constant 5.000000e+01 : f32
    %39 = vector.broadcast %cst_14 : f32 to vector<8x128xf32>
    %40 = arith.mulf %38, %39 : vector<8x128xf32>
    %41 = math.tanh %40 : vector<8x128xf32>
    %42 = arith.addf %28, %41 : vector<8x128xf32>
    %c2_15 = arith.constant 2 : index
    %43 = memref.load %arg3[%c2_15] : memref<6xf32, #tpu.memory_space<smem>>
    %44 = vector.broadcast %43 : f32 to vector<8x128xf32>
    %45 = arith.subf %4, %44 : vector<8x128xf32>
    %cst_16 = arith.constant 5.000000e+01 : f32
    %46 = vector.broadcast %cst_16 : f32 to vector<8x128xf32>
    %47 = arith.mulf %45, %46 : vector<8x128xf32>
    %48 = math.tanh %47 : vector<8x128xf32>
    %49 = arith.addf %35, %48 : vector<8x128xf32>
    %c3 = arith.constant 3 : index
    %50 = memref.load %arg2[%c3] : memref<6xf32, #tpu.memory_space<smem>>
    %51 = vector.broadcast %50 : f32 to vector<8x128xf32>
    %52 = arith.subf %3, %51 : vector<8x128xf32>
    %cst_17 = arith.constant 5.000000e+01 : f32
    %53 = vector.broadcast %cst_17 : f32 to vector<8x128xf32>
    %54 = arith.mulf %52, %53 : vector<8x128xf32>
    %55 = math.tanh %54 : vector<8x128xf32>
    %56 = arith.addf %42, %55 : vector<8x128xf32>
    %c3_18 = arith.constant 3 : index
    %57 = memref.load %arg3[%c3_18] : memref<6xf32, #tpu.memory_space<smem>>
    %58 = vector.broadcast %57 : f32 to vector<8x128xf32>
    %59 = arith.subf %4, %58 : vector<8x128xf32>
    %cst_19 = arith.constant 5.000000e+01 : f32
    %60 = vector.broadcast %cst_19 : f32 to vector<8x128xf32>
    %61 = arith.mulf %59, %60 : vector<8x128xf32>
    %62 = math.tanh %61 : vector<8x128xf32>
    %63 = arith.addf %49, %62 : vector<8x128xf32>
    %c4 = arith.constant 4 : index
    %64 = memref.load %arg2[%c4] : memref<6xf32, #tpu.memory_space<smem>>
    %65 = vector.broadcast %64 : f32 to vector<8x128xf32>
    %66 = arith.subf %3, %65 : vector<8x128xf32>
    %cst_20 = arith.constant 5.000000e+01 : f32
    %67 = vector.broadcast %cst_20 : f32 to vector<8x128xf32>
    %68 = arith.mulf %66, %67 : vector<8x128xf32>
    %69 = math.tanh %68 : vector<8x128xf32>
    %70 = arith.addf %56, %69 : vector<8x128xf32>
    %c4_21 = arith.constant 4 : index
    %71 = memref.load %arg3[%c4_21] : memref<6xf32, #tpu.memory_space<smem>>
    %72 = vector.broadcast %71 : f32 to vector<8x128xf32>
    %73 = arith.subf %4, %72 : vector<8x128xf32>
    %cst_22 = arith.constant 5.000000e+01 : f32
    %74 = vector.broadcast %cst_22 : f32 to vector<8x128xf32>
    %75 = arith.mulf %73, %74 : vector<8x128xf32>
    %76 = math.tanh %75 : vector<8x128xf32>
    %77 = arith.addf %63, %76 : vector<8x128xf32>
    %c5 = arith.constant 5 : index
    %78 = memref.load %arg2[%c5] : memref<6xf32, #tpu.memory_space<smem>>
    %79 = vector.broadcast %78 : f32 to vector<8x128xf32>
    %80 = arith.subf %3, %79 : vector<8x128xf32>
    %cst_23 = arith.constant 5.000000e+01 : f32
    %81 = vector.broadcast %cst_23 : f32 to vector<8x128xf32>
    %82 = arith.mulf %80, %81 : vector<8x128xf32>
    %83 = math.tanh %82 : vector<8x128xf32>
    %84 = arith.addf %70, %83 : vector<8x128xf32>
    %c5_24 = arith.constant 5 : index
    %85 = memref.load %arg3[%c5_24] : memref<6xf32, #tpu.memory_space<smem>>
    %86 = vector.broadcast %85 : f32 to vector<8x128xf32>
    %87 = arith.subf %4, %86 : vector<8x128xf32>
    %cst_25 = arith.constant 5.000000e+01 : f32
    %88 = vector.broadcast %cst_25 : f32 to vector<8x128xf32>
    %89 = arith.mulf %87, %88 : vector<8x128xf32>
    %90 = math.tanh %89 : vector<8x128xf32>
    %91 = arith.addf %77, %90 : vector<8x128xf32>
    %92 = arith.subf %84, %91 : vector<8x128xf32>
    %cst_26 = arith.constant 5.000000e-01 : f32
    %93 = vector.broadcast %cst_26 : f32 to vector<8x128xf32>
    %94 = arith.mulf %93, %92 : vector<8x128xf32>
    %95 = arith.mulf %5, %94 : vector<8x128xf32>
    %96 = arith.mulf %95, %94 : vector<8x128xf32>
    %c0_27 = arith.constant 0 : index
    %c0_28 = arith.constant 0 : index
    %97 = vector.load %arg8[%c0_27, %c0_28] : memref<8x128xf32, #tpu.memory_space<vmem>>, vector<8x128xf32>
    %98 = vector.shape_cast %96 : vector<8x128xf32> to vector<1x8x128xf32>
    %cst_29 = arith.constant dense<0.000000e+00> : vector<8x128xf32>
    %99 = vector.multi_reduction <add>, %98, %cst_29 [0] : vector<1x8x128xf32> to vector<8x128xf32>
    %100 = arith.addf %97, %99 : vector<8x128xf32>
    %c0_30 = arith.constant 0 : index
    %c0_31 = arith.constant 0 : index
    %101 = vector.load %arg8[%c0_30, %c0_31] : memref<8x128xf32, #tpu.memory_space<vmem>>, vector<8x128xf32>
    tpu.vector_store %arg8[%c0_30, %c0_31], %100 {strides = array<i32>} : memref<8x128xf32, #tpu.memory_space<vmem>>, vector<8x128xf32>,
    %c0_i32_32 = arith.constant 0 : i32
    %102 = arith.cmpi eq, %arg1, %c0_i32_32 : i32
    %103 = arith.extui %102 : i1 to i32
    %c0_i32_33 = arith.constant 0 : i32
    %104 = arith.cmpi ne, %103, %c0_i32_33 : i32
    scf.if %104 {
      %c0_34 = arith.constant 0 : index
      %c0_35 = arith.constant 0 : index
      %105 = vector.load %arg8[%c0_34, %c0_35] : memref<8x128xf32, #tpu.memory_space<vmem>>, vector<8x128xf32>
      %c0_36 = arith.constant 0 : index
      %c0_37 = arith.constant 0 : index
      %106 = vector.load %arg7[%c0_36, %c0_37] : memref<8x128xf32, #tpu.memory_space<vmem>>, vector<8x128xf32>
      tpu.vector_store %arg7[%c0_36, %c0_37], %105 {strides = array<i32>} : memref<8x128xf32, #tpu.memory_space<vmem>>, vector<8x128xf32>,
    } else {
    }
    return
  }
  func.func @transform_0(%arg0: i32, %arg1: i32, %arg2: memref<6xf32, #tpu.memory_space<smem>>, %arg3: memref<6xf32, #tpu.memory_space<smem>>) -> (i32, i32) {
    %c1_i32 = arith.constant 1 : i32
    %0 = arith.muli %arg0, %c1_i32 : i32
    %1 = arith.addi %0, %arg1 : i32
    %c0_i32 = arith.constant 0 : i32
    %c0_i32_0 = arith.constant 0 : i32
    return %1, %c0_i32 : i32, i32
  }
  func.func @transform_1(%arg0: i32, %arg1: i32, %arg2: memref<6xf32, #tpu.memory_space<smem>>, %arg3: memref<6xf32, #tpu.memory_space<smem>>) -> (i32, i32) {
    %c1_i32 = arith.constant 1 : i32
    %0 = arith.muli %arg0, %c1_i32 : i32
    %1 = arith.addi %0, %arg1 : i32
    %c0_i32 = arith.constant 0 : i32
    %c0_i32_0 = arith.constant 0 : i32
    return %1, %c0_i32 : i32, i32
  }
  func.func @transform_2(%arg0: i32, %arg1: i32, %arg2: memref<6xf32, #tpu.memory_space<smem>>, %arg3: memref<6xf32, #tpu.memory_space<smem>>) -> (i32, i32) {
    %c1_i32 = arith.constant 1 : i32
    %0 = arith.muli %arg0, %c1_i32 : i32
    %1 = arith.addi %0, %arg1 : i32
    %c0_i32 = arith.constant 0 : i32
    %c0_i32_0 = arith.constant 0 : i32
    return %1, %c0_i32 : i32, i32
  }
  func.func @transform_3(%arg0: i32, %arg1: i32, %arg2: memref<6xf32, #tpu.memory_space<smem>>, %arg3: memref<6xf32, #tpu.memory_space<smem>>) -> (i32, i32) {
    %c0_i32 = arith.constant 0 : i32
    %c0_i32_0 = arith.constant 0 : i32
    return %arg0, %c0_i32 : i32, i32
  }
}

</mosaic_0001>

<bundles_post_ra>
// kernel: ekd_forward.2
= control target key start
LH: loop header
LB: loop body
LE: loop exit
PB: predicated region body
PF: predicated region fallthrough
CT: control target
= control target key end

     0   :  { %v2014_v31 = vmov 0   ;;  %s2865_s1 = inlined_call_operand.<no memory space> [shape: s32[1], index: 1, kind: input, shape index: {}, may-alias: {0,1}]   ;;  %s2866_s0 = inlined_call_operand.<no memory space> [shape: s32[1], index: 0, kind: input, shape index: {}, may-alias: {0,1}]   ;;  %s2867_s3 = inlined_call_operand.vmem [shape: f32[128,128], index: 3, kind: input, shape index: {}, may-alias: {2,3}]   ;;  %s2868_s2 = inlined_call_operand.vmem [shape: f32[128,128], index: 2, kind: input, shape index: {}, may-alias: {2,3}]   ;;  %s2869_s6 = inlined_call_operand.vmem [shape: f32[128,1], index: 6, kind: input, shape index: {}]   ;;  %s2870_s5 = inlined_call_operand.vmem [shape: f32[128,128], index: 5, kind: input, shape index: {}, may-alias: {4,5}]   ;;  %s2871_s4 = inlined_call_operand.vmem [shape: f32[128,128], index: 4, kind: input, shape index: {}, may-alias: {4,5}]   ;;  %s2872_s8 = inlined_call_operand.vmem [shape: f32[128,1], index: 8, kind: input, shape index: {}]   ;;  %s2873_s7 = inlined_call_operand.vmem [shape: f32[1,128], index: 7, kind: input, shape index: {}]   ;;  %s2874_s10 = inlined_call_operand.vmem [shape: f32[128,128], index: 10, kind: output, shape index: {0}]   ;;  %s2875_s9 = inlined_call_operand.vmem [shape: f32[1,128], index: 9, kind: input, shape index: {}]   ;;  %s2876_s11 = inlined_call_operand.vmem [shape: f32[128,128], index: 11, kind: output, shape index: {1}]  }
   0x1   :  { %s1707_s19 = sshll.u32 %s2865_s1, 4  ;;  %s1705_s22 = sshll.u32 %s2866_s0, 4  ;;  %2013 = vset.pattern.permute.xlu1 %v2014_v31  ;;  %2012 = vset.pattern.permute.xlu0 %v2014_v31 }
   0x2   :  { %p167_p0 = scmp.lt.s32.totalorder %s1707_s19, 15  ;;  %p159_p1 = scmp.lt.s32.totalorder %s1705_s22, 15 }
   0x3   :  { %p198_p2 = scmp.lt.s32.totalorder %s2865_s1, 0 }
   0x4   :  { %s2878_s19 = smov (!%p167_p0, %s1707_s19), 15  ;;  %s2880_s22 = smov (!%p159_p1, %s1705_s22), 15 }
   0x5   :  { %s1708_s25 = sshll.u32 %s2878_s19, 3  ;;  %s2097_s28 = sshll.u32 %s2880_s22, 3 }
   0x6   :  { %s2094_s0 = scalar_lea.vmem %s2867_s3, %s1708_s25  ;;  %s2882_s1 = smov (!%p198_p2, %s2865_s1), 0 }
   0x7   :  { %v2100_v0 = vld [vmem:[%s2094_s0 + $0x70] sm:$0xff]  ;;  %v2103_v1 = vld [vmem:[%s2094_s0 + $0x78] sm:$0xff]  ;;  %v2106_v2 = vld [vmem:[%s2094_s0 + $0x60] sm:$0xff]  ;;  %s2128_s13 = scalar_lea.vmem %s2868_s2, %s2097_s28  ;;  %s222_s14 = sadd.s32 %s2882_s1, %s2880_s22 }
   0x8   :  { %v2110_v3 = vpack.c.bf16 %v2103_v1, %v2100_v0  ;;  %v2113_v4 = vld [vmem:[%s2094_s0 + $0x68] sm:$0xff]  ;;  %v242_v6 = vld [vmem:[%s2128_s13] sm:$0xff]  ;;  %v2141_v8 = vld [vmem:[%s2094_s0 + $0x50] sm:$0xff]  ;;  %s2225_s16 = scalar_lea.vmem %s2869_s6, %s2097_s28  ;;  %s2245_s18 = scalar_lea.vmem %s2870_s5, %s1708_s25 }
   0x9   :  { %v2122_v5 = vpack.c.bf16 %v2113_v4, %v2106_v2  ;;  %v243_v7 = vld [vmem:[%s2128_s13 + $0x8] sm:$0xff]  ;;  %v2144_v9 = vld [vmem:[%s2094_s0 + $0x58] sm:$0xff]  ;;  %v2160_v17 = vld [vmem:[%s2094_s0 + $0x40] sm:$0xff]  ;;  %s2372_s20 = scalar_lea.vmem %s2871_s4, %s2097_s28  ;;  %s2402_s23 = scalar_lea.vmem %s2872_s8, %s2097_s28 }
   0xa   :  { %1819 = vmatprep.subr.bf16.mxu0 %v2110_v3  ;;  %1851 = vmatprep.subr.bf16.mxu1 %v2110_v3  ;;  %v2146_v10 = vpack.c.bf16 %v243_v7, %v242_v6  ;;  %v2153_v13 = vpack.c.bf16 %v2144_v9, %v2141_v8  ;;  %v2163_v18 = vld [vmem:[%s2094_s0 + $0x48] sm:$0xff]  ;;  %v2174_v20 = vld [vmem:[%s2094_s0 + $0x30] sm:$0xff]  ;;  %v2177_v21 = vld [vmem:[%s2094_s0 + $0x38] sm:$0xff]  ;;  %v344_v37 = vunpack.c.l.bf16 %v2110_v3  ;;  %v345_v38 = vunpack.c.h.bf16 %v2110_v3  ;;  %s200_s25 = scalar_lea.vmem %s2873_s7, %s2882_s1  ;;  %s2706_s26 = sshll.u32 %s222_s14, 3 }
   0xb   :  { %1820 = vmatpush3.bf16.xpose.msra.mxu0 %v2110_v3  ;;  %1852 = vmatpush3.bf16.xpose.msra.mxu1 %v2110_v3  ;;  %v2167_v19 = vpack.c.bf16 %v2163_v18, %v2160_v17  ;;  %v2181_v22 = vpack.c.bf16 %v2177_v21, %v2174_v20  ;;  %v2188_v23 = vld [vmem:[%s2094_s0 + $0x20] sm:$0xff]  ;;  %v2191_v24 = vld [vmem:[%s2094_s0 + $0x28] sm:$0xff]  ;;  %v2202_v26 = vld [vmem:[%s2094_s0 + $0x10] sm:$0xff]  ;;  %v342_v57 = vunpack.c.l.bf16 %v2122_v5  ;;  %v343_v58 = vunpack.c.h.bf16 %v2122_v5  ;;  %s213_s28 = scalar_lea.vmem %s2875_s9, %s2882_s1  ;;  %s2817_s1 = scalar_lea.vmem %s2876_s11, %s2706_s26 }
   0xc   :  { %1821 = vmatprep.subr.bf16.mxu0 %v2122_v5  ;;  %1853 = vmatprep.subr.bf16.mxu1 %v2122_v5  ;;  %v290_v11 = vunpack.c.l.bf16 %v2146_v10  ;;  %v291_v12 = vunpack.c.h.bf16 %v2146_v10  ;;  %v2195_v25 = vpack.c.bf16 %v2191_v24, %v2188_v23  ;;  %v2205_v27 = vld [vmem:[%s2094_s0 + $0x18] sm:$0xff]  ;;  %v2216_v29 = vld [vmem:[%s2094_s0] sm:$0xff]  ;;  %v2219_v30 = vld [vmem:[%s2094_s0 + $0x8] sm:$0xff]  ;;  %v360_v44 = vsub.f32 %v2100_v0, %v344_v37  ;;  %s2716_s0 = scalar_lea.vmem %s2874_s10, %s2706_s26 }
   0xd   :  { %1835 = vmatprep.mubr.bf16.mxu0 %v2146_v10  ;;  %v2209_v28 = vpack.c.bf16 %v2205_v27, %v2202_v26  ;;  %v1269_v32 = vld [vmem:[%s2225_s16 + $0x10] sm:$0xff]  ;;  %v1267_v33 = vld [vmem:[%s2225_s16] sm:$0xff]  ;;  %v245_v35 = vld [vmem:[%s2128_s13 + $0x18] sm:$0xff]  ;;  %v2233_v36 = vpack.c.bf16 %v2219_v30, %v2216_v29  ;;  %v361_v45 = vsub.f32 %v2103_v1, %v345_v38  ;;  %v340_v38 = vunpack.c.l.bf16 %v2153_v13 }
   0xe   :  { %v306_v14 = vsub.f32 %v242_v6, %v290_v11  ;;  %v307_v15 = vsub.f32 %v243_v7, %v291_v12  ;;  %v244_v34 = vld [vmem:[%s2128_s13 + $0x10] sm:$0xff]  ;;  %1296 = vperm.xlu1 %2013, %v1269_v32   ;;  %1286 = vperm.xlu0 %2012, %v1267_v33   ;;  %v246_v39 = vld [vmem:[%s2128_s13 + $0x20] sm:$0xff]  ;;  %v247_v41 = vld [vmem:[%s2128_s13 + $0x28] sm:$0xff]  ;;  %v358_v6 = vsub.f32 %v2106_v2, %v342_v57 }
   0xf   :  { %v2238_v40 = vpack.c.bf16 %v245_v35, %v244_v34  ;;  %v1270_v42 = vld [vmem:[%s2225_s16 + $0x18] sm:$0xff]  ;;  %v1268_v43 = vld [vmem:[%s2225_s16 + $0x8] sm:$0xff]  ;;  %v2257_v46 = vld [vmem:[%s2245_s18 + $0x70] sm:$0xff]  ;;  %v2262_v48 = vpack.c.bf16 %v247_v41, %v246_v39  ;;  %v369_v55 = vpack.c.bf16 %v361_v45, %v360_v44  ;;  %v359_v7 = vsub.f32 %v2113_v4, %v343_v58 }
  0x10   :  { %v322_v16 = vpack.c.bf16 %v307_v15, %v306_v14  ;;  %v2260_v47 = vld [vmem:[%s2245_s18 + $0x78] sm:$0xff]  ;;  %v1272_v51 = vld [vmem:[%s2225_s16 + $0x28] sm:$0xff]  ;;  %v1271_v52 = vld [vmem:[%s2225_s16 + $0x20] sm:$0xff]  ;;  %v356_v57 = vsub.f32 %v2141_v8, %v340_v38 }
  0x11   :  { %v292_v49 = vunpack.c.l.bf16 %v2238_v40  ;;  %v293_v50 = vunpack.c.h.bf16 %v2238_v40  ;;  %v248_v53 = vld [vmem:[%s2128_s13 + $0x30] sm:$0xff]  ;;  %v249_v54 = vld [vmem:[%s2128_s13 + $0x38] sm:$0xff]  ;;  %v2272_v56 = vpack.c.bf16 %v2260_v47, %v2257_v46  ;;  %v294_v59 = vunpack.c.l.bf16 %v2262_v48  ;;  %v250_v0 = vld [vmem:[%s2128_s13 + $0x40] sm:$0xff] }
  0x12   :  { %1867 = vmatprep.mubr.bf16.mxu1 %v322_v16  ;;  %1301 = vperm.xlu1 %2013, %v1270_v42   ;;  %v295_v60 = vunpack.c.h.bf16 %v2262_v48  ;;  %v2278_v63 = vpack.c.bf16 %v249_v54, %v248_v53  ;;  %v251_v1 = vld [vmem:[%s2128_s13 + $0x48] sm:$0xff]  ;;  %v1274_v3 = vld [vmem:[%s2225_s16 + $0x38] sm:$0xff]  ;;  %v2290_v11 = vld [vmem:[%s2245_s18 + $0x60] sm:$0xff] }
  0x13   :  { %1822 = vmatpush3.bf16.xpose.msra.mxu0 %v2122_v5  ;;  %1854 = vmatpush3.bf16.xpose.msra.mxu1 %v2122_v5  ;;  %v308_v61 = vsub.f32 %v244_v34, %v292_v49  ;;  %v309_v62 = vsub.f32 %v245_v35, %v293_v50  ;;  %v1273_v5 = vld [vmem:[%s2225_s16 + $0x30] sm:$0xff]  ;;  %v2293_v12 = vld [vmem:[%s2245_s18 + $0x68] sm:$0xff]  ;;  %v310_v14 = vsub.f32 %v246_v39, %v294_v59  ;;  %v253_v4 = vld [vmem:[%s2128_s13 + $0x58] sm:$0xff]  ;;  %v341_v39 = vunpack.c.h.bf16 %v2153_v13 }
  0x14   :  { %1823 = vmatprep.subr.bf16.mxu0 %v2153_v13  ;;  %1855 = vmatprep.subr.bf16.mxu1 %v2153_v13  ;;  %v311_v15 = vsub.f32 %v247_v41, %v295_v60  ;;  %v2295_v16 = vpack.c.bf16 %v251_v1, %v250_v0  ;;  %v296_v32 = vunpack.c.l.bf16 %v2278_v63  ;;  %v297_v33 = vunpack.c.h.bf16 %v2278_v63  ;;  %v1276_v34 = vld [vmem:[%s2225_s16 + $0x48] sm:$0xff]  ;;  %v252_v2 = vld [vmem:[%s2128_s13 + $0x50] sm:$0xff]  ;;  %v254_v50 = vld [vmem:[%s2128_s13 + $0x60] sm:$0xff] }
  0x15   :  { %1291 = vperm.xlu0 %2012, %v1268_v43   ;;  %v323_v31 = vpack.c.bf16 %v309_v62, %v308_v61  ;;  %v368_v35 = vpack.c.bf16 %v359_v7, %v358_v6  ;;  %v2304_v37 = vpack.c.bf16 %v2293_v12, %v2290_v11  ;;  %v2311_v49 = vpack.c.bf16 %v253_v4, %v252_v2  ;;  %v256_v8 = vld [vmem:[%s2128_s13 + $0x70] sm:$0xff]  ;;  %v1280_v38 = vld [vmem:[%s2225_s16 + $0x68] sm:$0xff] }
  0x16   :  { %1311 = vperm.xlu1 %2013, %v1272_v51   ;;  %v324_v41 = vpack.c.bf16 %v311_v15, %v310_v14  ;;  %v298_v42 = vunpack.c.l.bf16 %v2295_v16  ;;  %v299_v43 = vunpack.c.h.bf16 %v2295_v16  ;;  %v312_v44 = vsub.f32 %v248_v53, %v296_v32  ;;  %v255_v51 = vld [vmem:[%s2128_s13 + $0x68] sm:$0xff]  ;;  %v2322_v53 = vld [vmem:[%s2245_s18 + $0x50] sm:$0xff] }
  0x17   :  { %v313_v45 = vsub.f32 %v249_v54, %v297_v33  ;;  %v357_v58 = vsub.f32 %v2144_v9, %v341_v39  ;;  %v2325_v54 = vld [vmem:[%s2245_s18 + $0x58] sm:$0xff]  ;;  %v2328_v60 = vpack.c.bf16 %v255_v51, %v254_v50  ;;  %v300_v62 = vunpack.c.l.bf16 %v2311_v49 }
  0x18   :  { %v315_v59 = vsub.f32 %v251_v1, %v299_v43  ;;  %v257_v9 = vld [vmem:[%s2128_s13 + $0x78] sm:$0xff]  ;;  %v2336_v6 = vpack.c.bf16 %v2325_v54, %v2322_v53  ;;  %v339_v1 = vunpack.c.h.bf16 %v2167_v19 }
  0x19   :  { %1306 = vperm.xlu0 %2012, %v1271_v52   ;;  %v1278_v52 = vld [vmem:[%s2225_s16 + $0x58] sm:$0xff]  ;;  %v325_v61 = vpack.c.bf16 %v313_v45, %v312_v44  ;;  %v302_v14 = vunpack.c.l.bf16 %v2328_v60  ;;  %v303_v15 = vunpack.c.h.bf16 %v2328_v60  ;;  %v2343_v33 = vpack.c.bf16 %v257_v9, %v256_v8 }
  0x1a   :  { %1321 = vperm.xlu1 %2013, %v1274_v3   ;;  %v301_v3 = vunpack.c.h.bf16 %v2311_v49  ;;  %v355_v39 = vsub.f32 %v2163_v18, %v339_v1  ;;  %v336_v45 = vunpack.c.l.bf16 %v2181_v22  ;;  %v1281_v1 = vld [vmem:[%s2225_s16 + $0x70] sm:$0xff] }
  0x1b   :  { %1824 = vmatpush3.bf16.xpose.msra.mxu0 %v2153_v13  ;;  %1856 = vmatpush3.bf16.xpose.msra.mxu1 %v2153_v13  ;;  %v1275_v13 = vld [vmem:[%s2225_s16 + $0x40] sm:$0xff]  ;;  %v304_v43 = vunpack.c.l.bf16 %v2343_v33  ;;  %v305_v44 = vunpack.c.h.bf16 %v2343_v33 }
  0x1c   :  { %1825 = vmatprep.subr.bf16.mxu0 %v2167_v19  ;;  %1857 = vmatprep.subr.bf16.mxu1 %v2167_v19  ;;  %v317_v32 = vsub.f32 %v253_v4, %v301_v3  ;;  %v319_v4 = vsub.f32 %v255_v51, %v303_v15  ;;  %v2387_v3 = vld [vmem:[%s2372_s20] sm:$0xff] }
  0x1d   :  { %1316 = vperm.xlu0 %2012, %v1273_v5   ;;  %v367_v5 = vpack.c.bf16 %v357_v58, %v356_v57  ;;  %v1279_v57 = vld [vmem:[%s2225_s16 + $0x60] sm:$0xff]  ;;  %v1282_v58 = vld [vmem:[%s2225_s16 + $0x78] sm:$0xff] }
  0x1e   :  { %1331 = vperm.xlu1 %2013, %v1276_v34   ;;  %v1277_v34 = vld [vmem:[%s2225_s16 + $0x50] sm:$0xff]  ;;  %v2416_v15 = vld [vmem:[%s2245_s18 + $0x20] sm:$0xff] }
  0x21   :  { %1326 = vperm.xlu0 %2012, %v1275_v13   ;;  %v320_v13 = vsub.f32 %v256_v8, %v304_v43  ;;  %v2390_v8 = vld [vmem:[%s2372_s20 + $0x8] sm:$0xff]  ;;  %v1438_v43 = vld [vmem:[%s2402_s23 + $0x20] sm:$0xff] }
  0x22   :  { %1341 = vperm.xlu1 %2013, %v1278_v52   ;;  %v321_v52 = vsub.f32 %v257_v9, %v305_v44  ;;  %v1441_v44 = vld [vmem:[%s2402_s23 + $0x38] sm:$0xff] }
  0x23   :  { %1826 = vmatpush3.bf16.xpose.msra.mxu0 %v2167_v19  ;;  %1858 = vmatpush3.bf16.xpose.msra.mxu1 %v2167_v19 }
  0x24   :  { %1827 = vmatprep.subr.bf16.mxu0 %v2181_v22  ;;  %1859 = vmatprep.subr.bf16.mxu1 %v2181_v22 }
  0x25   :  { %1336 = vperm.xlu0 %2012, %v1277_v34   ;;  %v1437_v34 = vld [vmem:[%s2402_s23 + $0x18] sm:$0xff] }
  0x26   :  { %1351 = vperm.xlu1 %2013, %v1280_v38  }
  0x29   :  { %1346 = vperm.xlu0 %2012, %v1279_v57   ;;  %v2458_v57 = vld [vmem:[%s2245_s18] sm:$0xff] }
  0x2a   :  { %1361 = vperm.xlu1 %2013, %v1282_v58   ;;  %v1442_v58 = vld [vmem:[%s2402_s23 + $0x40] sm:$0xff] }
  0x2b   :  { %1828 = vmatpush3.bf16.xpose.msra.mxu0 %v2181_v22  ;;  %1860 = vmatpush3.bf16.xpose.msra.mxu1 %v2181_v22 }
  0x2c   :  { %1829 = vmatprep.subr.bf16.mxu0 %v2195_v25  ;;  %1861 = vmatprep.subr.bf16.mxu1 %v2195_v25 }
  0x2d   :  { %1356 = vperm.xlu0 %2012, %v1281_v1  }
  0x33   :  { %1830 = vmatpush3.bf16.xpose.msra.mxu0 %v2195_v25  ;;  %1862 = vmatpush3.bf16.xpose.msra.mxu1 %v2195_v25 }
  0x34   :  { %1831 = vmatprep.subr.bf16.mxu0 %v2209_v28  ;;  %1863 = vmatprep.subr.bf16.mxu1 %v2209_v28 }
  0x3b   :  { %1832 = vmatpush3.bf16.xpose.msra.mxu0 %v2209_v28  ;;  %1864 = vmatpush3.bf16.xpose.msra.mxu1 %v2209_v28 }
  0x3c   :  { %1833 = vmatprep.subr.bf16.mxu0 %v2233_v36  ;;  %1865 = vmatprep.subr.bf16.mxu1 %v2233_v36 }
  0x43   :  { %1834 = vmatpush3.bf16.xpose.msra.mxu0 %v2233_v36  ;;  %1866 = vmatpush3.bf16.xpose.msra.mxu1 %v2233_v36 }
  0x44   :  { %1883 = vmatprep.subr.bf16.mxu0 %v369_v55  ;;  %1915 = vmatprep.subr.bf16.mxu1 %v2272_v56 }
  0x4a   :  { %1836 = vmatmul.mubr.bf16.vlgmr.msra.gmra.mxu0 %v2238_v40  ;;  %1868 = vmatmul.mubr.bf16.vlgmr.msra.gmra.mxu1 %v323_v31  ;;  %v316_v31 = vsub.f32 %v252_v2, %v300_v62  ;;  %v318_v2 = vsub.f32 %v254_v50, %v302_v14  ;;  %v337_v50 = vunpack.c.h.bf16 %v2181_v22  ;;  %v352_v22 = vsub.f32 %v2174_v20, %v336_v45 }
  0x4b   :  { %1884 = vmatpush3.bf16.xpose.msra.mxu0 %v369_v55  ;;  %1916 = vmatpush3.bf16.xpose.msra.mxu1 %v2272_v56  ;;  %v314_v55 = vsub.f32 %v250_v0, %v298_v42  ;;  %v338_v0 = vunpack.c.l.bf16 %v2167_v19  ;;  %v2355_v42 = vld [vmem:[%s2245_s18 + $0x48] sm:$0xff]  ;;  %v329_v62 = vpack.c.bf16 %v321_v52, %v320_v13 }
  0x4c   :  { %1885 = vmatprep.subr.bf16.mxu0 %v368_v35  ;;  %1917 = vmatprep.subr.bf16.mxu1 %v2304_v37  ;;  %v328_v51 = vpack.c.bf16 %v319_v4, %v318_v2 }
  0x4d   :  { %1839 = vmatprep.mubr.bf16.mxu0 %v2262_v48  ;;  %1871 = vmatprep.mubr.bf16.mxu1 %v324_v41  ;;  %v326_v7 = vpack.c.bf16 %v315_v59, %v314_v55  ;;  %v354_v19 = vsub.f32 %v2160_v17, %v338_v0  ;;  %v2352_v41 = vld [vmem:[%s2245_s18 + $0x40] sm:$0xff]  ;;  %v353_v55 = vsub.f32 %v2177_v21, %v337_v50  ;;  %v2380_v59 = vld [vmem:[%s2245_s18 + $0x30] sm:$0xff]  ;;  %v334_v21 = vunpack.c.l.bf16 %v2195_v25 }
  0x4e   :  { %v2362_v18 = vpack.c.bf16 %v2355_v42, %v2352_v41  ;;  %v2406_v0 = vpack.c.bf16 %v2390_v8, %v2387_v3  ;;  %v1440_v50 = vld [vmem:[%s2402_s23 + $0x30] sm:$0xff] }
  0x4f   :  { %v366_v17 = vpack.c.bf16 %v355_v39, %v354_v19  ;;  %v365_v9 = vpack.c.bf16 %v353_v55, %v352_v22  ;;  %v333_v19 = vunpack.c.h.bf16 %v2209_v28  ;;  %v1439_v39 = vld [vmem:[%s2402_s23 + $0x28] sm:$0xff]  ;;  %v1445_v22 = vld [vmem:[%s2402_s23 + $0x58] sm:$0xff] }
  0x51   :  { %v349_v4 = vsub.f32 %v2205_v27, %v333_v19  ;;  %v331_v27 = vunpack.c.h.bf16 %v2233_v36 }
  0x52   :  { %1840 = vmatmul.mubr.bf16.gmra.mxu0 %v2278_v63  ;;  %1872 = vmatmul.mubr.bf16.gmra.mxu1 %v325_v61  ;;  %v2383_v61 = vld [vmem:[%s2245_s18 + $0x38] sm:$0xff] }
  0x53   :  { %1886 = vmatpush3.bf16.xpose.msra.mxu0 %v368_v35  ;;  %1918 = vmatpush3.bf16.xpose.msra.mxu1 %v2304_v37  ;;  %v327_v35 = vpack.c.bf16 %v317_v32, %v316_v31  ;;  %v2394_v20 = vpack.c.bf16 %v2383_v61, %v2380_v59  ;;  %v2419_v31 = vld [vmem:[%s2245_s18 + $0x28] sm:$0xff]  ;;  %v1434_v32 = vld [vmem:[%s2402_s23] sm:$0xff]  ;;  %v347_v52 = vsub.f32 %v2219_v30, %v331_v27  ;;  %v780_v30 = vunpack.c.h.bf16 %v2272_v56 }
  0x54   :  { %1887 = vmatprep.subr.bf16.mxu0 %v367_v5  ;;  %1919 = vmatprep.subr.bf16.mxu1 %v2336_v6  ;;  %v2527_v27 = vld [vmem:[%s2372_s20 + $0x40] sm:$0xff] }
  0x55   :  { %1843 = vmatprep.mubr.bf16.mxu0 %v2295_v16  ;;  %1875 = vmatprep.mubr.bf16.mxu1 %v326_v7  ;;  %v350_v7 = vsub.f32 %v2188_v23, %v334_v21  ;;  %v2427_v23 = vpack.c.bf16 %v2419_v31, %v2416_v15  ;;  %v1447_v21 = vld [vmem:[%s2402_s23 + $0x68] sm:$0xff]  ;;  %v796_v1 = vsub.f32 %v2260_v47, %v780_v30  ;;  %v1448_v47 = vld [vmem:[%s2402_s23 + $0x70] sm:$0xff] }
  0x56   :  { %1453 = vperm.xlu0 %2012, %v1434_v32   ;;  %v777_v32 = vunpack.c.l.bf16 %v2304_v37 }
  0x5a   :  { %1844 = vmatmul.mubr.bf16.gmra.mxu0 %v2311_v49  ;;  %1876 = vmatmul.mubr.bf16.gmra.mxu1 %v327_v35  ;;  %v2438_v35 = vld [vmem:[%s2245_s18 + $0x10] sm:$0xff] }
  0x5b   :  { %1888 = vmatpush3.bf16.xpose.msra.mxu0 %v367_v5  ;;  %1920 = vmatpush3.bf16.xpose.msra.mxu1 %v2336_v6  ;;  %v335_v5 = vunpack.c.h.bf16 %v2195_v25  ;;  %v1435_v25 = vld [vmem:[%s2402_s23 + $0x8] sm:$0xff] }
  0x5c   :  { %1889 = vmatprep.subr.bf16.mxu0 %v366_v17  ;;  %1921 = vmatprep.subr.bf16.mxu1 %v2362_v18 }
  0x5d   :  { %1847 = vmatprep.mubr.bf16.mxu0 %v2328_v60  ;;  %1879 = vmatprep.mubr.bf16.mxu1 %v328_v51  ;;  %v351_v14 = vsub.f32 %v2191_v24, %v335_v5  ;;  %v332_v24 = vunpack.c.l.bf16 %v2209_v28  ;;  %v2441_v28 = vld [vmem:[%s2245_s18 + $0x18] sm:$0xff]  ;;  %v1443_v51 = vld [vmem:[%s2402_s23 + $0x48] sm:$0xff] }
  0x5e   :  { %1458 = vperm.xlu1 %2013, %v1435_v25   ;;  %v2447_v45 = vpack.c.bf16 %v2441_v28, %v2438_v35  ;;  %v1446_v25 = vld [vmem:[%s2402_s23 + $0x60] sm:$0xff] }
  0x5f   :  { %v364_v38 = vpack.c.bf16 %v351_v14, %v350_v7  ;;  %v348_v2 = vsub.f32 %v2202_v26, %v332_v24  ;;  %v330_v26 = vunpack.c.l.bf16 %v2233_v36  ;;  %v2461_v36 = vld [vmem:[%s2245_s18 + $0x8] sm:$0xff]  ;;  %v1449_v7 = vld [vmem:[%s2402_s23 + $0x78] sm:$0xff]  ;;  %v793_v24 = vsub.f32 %v2290_v11, %v777_v32 }
  0x60   :  { %v770_v32 = vunpack.c.h.bf16 %v2427_v23 }
  0x61   :  { %v346_v13 = vsub.f32 %v2216_v29, %v330_v26  ;;  %v779_v29 = vunpack.c.l.bf16 %v2272_v56 }
  0x62   :  { %1848 = vmatmul.mubr.bf16.gmra.mxu0 %v2343_v33  ;;  %1880 = vmatmul.mubr.bf16.gmra.mxu1 %v329_v62  ;;  %v2467_v62 = vpack.c.bf16 %v2461_v36, %v2458_v57 }
  0x63   :  { %1890 = vmatpush3.bf16.xpose.msra.mxu0 %v366_v17  ;;  %1922 = vmatpush3.bf16.xpose.msra.mxu1 %v2362_v18  ;;  %v363_v17 = vpack.c.bf16 %v349_v4, %v348_v2  ;;  %v362_v55 = vpack.c.bf16 %v347_v52, %v346_v13  ;;  %v795_v5 = vsub.f32 %v2257_v46, %v779_v29  ;;  %v2486_v46 = vld [vmem:[%s2372_s20 + $0x18] sm:$0xff]  ;;  %v2500_v2 = vld [vmem:[%s2372_s20 + $0x28] sm:$0xff]  ;;  %v774_v13 = vunpack.c.h.bf16 %v2362_v18 }
  0x64   :  { %1891 = vmatprep.subr.bf16.mxu0 %v365_v9  ;;  %1923 = vmatprep.subr.bf16.mxu1 %v2394_v20  ;;  %v2545_v52 = vld [vmem:[%s2372_s20 + $0x58] sm:$0xff]  ;;  %v772_v29 = vunpack.c.h.bf16 %v2394_v20 }
  0x65   :  { %1899 = vmatprep.mubr.bf16.mxu0 %v2146_v10  ;;  %1931 = vmatprep.mubr.bf16.mxu1 %v2406_v0  ;;  %v1436_v10 = vld [vmem:[%s2402_s23 + $0x10] sm:$0xff]  ;;  %v804_v14 = vpack.c.bf16 %v796_v1, %v795_v5  ;;  %v2577_v5 = vld [vmem:[%s2372_s20 + $0x78] sm:$0xff] }
  0x66   :  { %1468 = vperm.xlu1 %2013, %v1437_v34   ;;  %1463 = vperm.xlu0 %2012, %v1436_v10   ;;  %v778_v34 = vunpack.c.h.bf16 %v2304_v37 }
  0x68   :  { %v794_v19 = vsub.f32 %v2293_v12, %v778_v34  ;;  %v2512_v12 = vld [vmem:[%s2372_s20 + $0x30] sm:$0xff] }
  0x6a   :  { %1478 = vperm.xlu1 %2013, %v1439_v39   ;;  %1473 = vperm.xlu0 %2012, %v1438_v43   ;;  %v2497_v39 = vld [vmem:[%s2372_s20 + $0x20] sm:$0xff]  ;;  %v803_v4 = vpack.c.bf16 %v794_v19, %v793_v24  ;;  %v775_v43 = vunpack.c.l.bf16 %v2336_v6 }
  0x6b   :  { %1892 = vmatpush3.bf16.xpose.msra.mxu0 %v365_v9  ;;  %1924 = vmatpush3.bf16.xpose.msra.mxu1 %v2394_v20  ;;  %v1444_v9 = vld [vmem:[%s2402_s23 + $0x50] sm:$0xff]  ;;  %v2506_v11 = vpack.c.bf16 %v2500_v2, %v2497_v39 }
  0x6c   :  { %1893 = vmatprep.subr.bf16.mxu0 %v364_v38  ;;  %1925 = vmatprep.subr.bf16.mxu1 %v2427_v23  ;;  %v791_v26 = vsub.f32 %v2322_v53, %v775_v43 }
  0x6e   :  { %1488 = vperm.xlu1 %2013, %v1441_v44   ;;  %1483 = vperm.xlu0 %2012, %v1440_v50   ;;  %v776_v44 = vunpack.c.h.bf16 %v2336_v6  ;;  %v2530_v50 = vld [vmem:[%s2372_s20 + $0x48] sm:$0xff] }
  0x6f   :  { %v2536_v53 = vpack.c.bf16 %v2530_v50, %v2527_v27 }
  0x72   :  { %1498 = vperm.xlu1 %2013, %v1443_v51   ;;  %1493 = vperm.xlu0 %2012, %v1442_v58   ;;  %v773_v51 = vunpack.c.l.bf16 %v2362_v18 }
  0x73   :  { %1894 = vmatpush3.bf16.xpose.msra.mxu0 %v364_v38  ;;  %1926 = vmatpush3.bf16.xpose.msra.mxu1 %v2427_v23  ;;  %v2483_v38 = vld [vmem:[%s2372_s20 + $0x10] sm:$0xff] }
  0x74   :  { %1895 = vmatprep.subr.bf16.mxu0 %v363_v17  ;;  %1927 = vmatprep.subr.bf16.mxu1 %v2447_v45  ;;  %v2494_v10 = vpack.c.bf16 %v2486_v46, %v2483_v38  ;;  %v789_v58 = vsub.f32 %v2352_v41, %v773_v51  ;;  %v733_v51 = vunpack.c.l.bf16 %v2536_v53 }
  0x76   :  { %1508 = vperm.xlu1 %2013, %v1445_v22   ;;  %1503 = vperm.xlu0 %2012, %v1444_v9   ;;  %v790_v22 = vsub.f32 %v2355_v42, %v774_v13  ;;  %v725_v42 = vunpack.c.l.bf16 %v2406_v0  ;;  %v726_v9 = vunpack.c.h.bf16 %v2406_v0  ;;  %v734_v13 = vunpack.c.h.bf16 %v2536_v53 }
  0x78   :  { %v801_v30 = vpack.c.bf16 %v790_v22, %v789_v58 }
  0x7a   :  { %1518 = vperm.xlu1 %2013, %v1447_v21   ;;  %1513 = vperm.xlu0 %2012, %v1446_v25   ;;  %v2574_v21 = vld [vmem:[%s2372_s20 + $0x70] sm:$0xff]  ;;  %v788_v25 = vsub.f32 %v2383_v61, %v772_v29  ;;  %v786_v61 = vsub.f32 %v2419_v31, %v770_v32  ;;  %v765_v31 = vunpack.c.l.bf16 %v2467_v62 }
  0x7b   :  { %1896 = vmatpush3.bf16.xpose.msra.mxu0 %v363_v17  ;;  %1928 = vmatpush3.bf16.xpose.msra.mxu1 %v2447_v45  ;;  %v2515_v17 = vld [vmem:[%s2372_s20 + $0x38] sm:$0xff] }
  0x7c   :  { %1897 = vmatprep.subr.bf16.mxu0 %v362_v55  ;;  %1929 = vmatprep.subr.bf16.mxu1 %v2467_v62 }
  0x7e   :  { %1528 = vperm.xlu1 %2013, %v1449_v7   ;;  %1523 = vperm.xlu0 %2012, %v1448_v47   ;;  %v2588_v7 = vpack.c.bf16 %v2577_v5, %v2574_v21 }
  0x83   :  { %1898 = vmatpush3.bf16.xpose.msra.mxu0 %v362_v55  ;;  %1930 = vmatpush3.bf16.xpose.msra.mxu1 %v2467_v62  ;;  %v2560_v55 = vld [vmem:[%s2372_s20 + $0x68] sm:$0xff] }
  0x84   :  { %1947 = vmatprep.subr.bf16.mxu0 %v2272_v56  ;;  %1979 = vmatprep.subr.bf16.mxu1 %v804_v14 }
  0x8a   :  { %1900 = vmatmul.mubr.bf16.vlgmr.msra.gmra.mxu0 %v2238_v40  ;;  %1932 = vmatmul.mubr.bf16.vlgmr.msra.gmra.mxu1 %v2494_v10  ;;  %v792_v40 = vsub.f32 %v2325_v54, %v776_v44  ;;  %v2542_v54 = vld [vmem:[%s2372_s20 + $0x50] sm:$0xff] }
  0x8b   :  { %1948 = vmatpush3.bf16.xpose.msra.mxu0 %v2272_v56  ;;  %1980 = vmatpush3.bf16.xpose.msra.mxu1 %v804_v14  ;;  %v2524_v56 = vpack.c.bf16 %v2515_v17, %v2512_v12 }
  0x8c   :  { %1903 = vmatprep.mubr.bf16.mxu0 %v2262_v48  ;;  %1949 = vmatprep.subr.bf16.mxu0 %v2304_v37  ;;  %v802_v48 = vpack.c.bf16 %v792_v40, %v791_v26 }
  0x8d   :  { %1981 = vmatprep.subr.bf16.mxu1 %v803_v4  ;;  %1935 = vmatprep.mubr.bf16.mxu1 %v2506_v11  ;;  %v731_v26 = vunpack.c.l.bf16 %v2524_v56  ;;  %v732_v40 = vunpack.c.h.bf16 %v2524_v56 }
  0x92   :  { %1904 = vmatmul.mubr.bf16.gmra.mxu0 %v2278_v63  ;;  %1936 = vmatmul.mubr.bf16.gmra.mxu1 %v2524_v56  ;;  %v2554_v63 = vpack.c.bf16 %v2545_v52, %v2542_v54 }
  0x93   :  { %1950 = vmatpush3.bf16.xpose.msra.mxu0 %v2304_v37  ;;  %1982 = vmatpush3.bf16.xpose.msra.mxu1 %v803_v4  ;;  %v2557_v37 = vld [vmem:[%s2372_s20 + $0x60] sm:$0xff]  ;;  %v730_v4 = vunpack.c.h.bf16 %v2506_v11 }
  0x94   :  { %1907 = vmatprep.mubr.bf16.mxu0 %v2295_v16  ;;  %1951 = vmatprep.subr.bf16.mxu0 %v2336_v6  ;;  %v771_v16 = vunpack.c.l.bf16 %v2394_v20  ;;  %v2566_v41 = vpack.c.bf16 %v2560_v55, %v2557_v37  ;;  %v735_v58 = vunpack.c.l.bf16 %v2554_v63  ;;  %v736_v22 = vunpack.c.h.bf16 %v2554_v63 }
  0x95   :  { %1983 = vmatprep.subr.bf16.mxu1 %v802_v48  ;;  %1939 = vmatprep.mubr.bf16.mxu1 %v2536_v53 }
  0x96   :  { %v787_v1 = vsub.f32 %v2380_v59, %v771_v16  ;;  %v737_v29 = vunpack.c.l.bf16 %v2566_v41 }
  0x98   :  { %v800_v14 = vpack.c.bf16 %v788_v25, %v787_v1 }
  0x9a   :  { %1908 = vmatmul.mubr.bf16.gmra.mxu0 %v2311_v49  ;;  %1940 = vmatmul.mubr.bf16.gmra.mxu1 %v2554_v63  ;;  %v741_v49 = vsub.f32 %v2387_v3, %v725_v42  ;;  %v740_v42 = vunpack.c.h.bf16 %v2588_v7 }
  0x9b   :  { %1952 = vmatpush3.bf16.xpose.msra.mxu0 %v2336_v6  ;;  %1984 = vmatpush3.bf16.xpose.msra.mxu1 %v802_v48  ;;  %v742_v6 = vsub.f32 %v2390_v8, %v726_v9  ;;  %v767_v8 = vunpack.c.l.bf16 %v2447_v45 }
  0x9c   :  { %1911 = vmatprep.mubr.bf16.mxu0 %v2328_v60  ;;  %1953 = vmatprep.subr.bf16.mxu0 %v2362_v18  ;;  %v769_v60 = vunpack.c.l.bf16 %v2427_v23 }
  0x9d   :  { %1985 = vmatprep.subr.bf16.mxu1 %v801_v30  ;;  %1943 = vmatprep.mubr.bf16.mxu1 %v2566_v41  ;;  %v757_v34 = vpack.c.bf16 %v742_v6, %v741_v49 }
  0x9e   :  { %v785_v59 = vsub.f32 %v2416_v15, %v769_v60 }
  0xa0   :  { %v799_v3 = vpack.c.bf16 %v786_v61, %v785_v59 }
  0xa2   :  { %1912 = vmatmul.mubr.bf16.gmra.mxu0 %v2343_v33  ;;  %1944 = vmatmul.mubr.bf16.gmra.mxu1 %v2588_v7  ;;  %v768_v33 = vunpack.c.h.bf16 %v2447_v45 }
  0xa3   :  { %1954 = vmatpush3.bf16.xpose.msra.mxu0 %v2362_v18  ;;  %1986 = vmatpush3.bf16.xpose.msra.mxu1 %v801_v30  ;;  %v783_v18 = vsub.f32 %v2438_v35, %v767_v8  ;;  %v727_v35 = vunpack.c.l.bf16 %v2494_v10  ;;  %v739_v30 = vunpack.c.l.bf16 %v2588_v7 }
  0xa4   :  { %1955 = vmatprep.subr.bf16.mxu0 %v2394_v20  ;;  %1987 = vmatprep.subr.bf16.mxu1 %v800_v14  ;;  %v784_v15 = vsub.f32 %v2441_v28, %v768_v33  ;;  %v728_v28 = vunpack.c.h.bf16 %v2494_v10 }
  0xa5   :  { %1963 = vmatprep.mubr.bf16.mxu0 %v757_v34  ;;  %1995 = vmatprep.mubr.bf16.mxu1 %v2406_v0  ;;  %v766_v0 = vunpack.c.h.bf16 %v2467_v62  ;;  %v743_v43 = vsub.f32 %v2483_v38, %v727_v35  ;;  %v748_v38 = vsub.f32 %v2515_v17, %v732_v40  ;;  %v753_v17 = vsub.f32 %v2557_v37, %v737_v29 }
  0xa6   :  { %v798_v47 = vpack.c.bf16 %v784_v15, %v783_v18  ;;  %v1287_v18 = vpop.permute.xlu0 %1286 }
  0xa7   :  { %v782_v24 = vsub.f32 %v2461_v36, %v766_v0  ;;  %v746_v36 = vsub.f32 %v2500_v2, %v730_v4 }
  0xab   :  { %1956 = vmatpush3.bf16.xpose.msra.mxu0 %v2394_v20  ;;  %1988 = vmatpush3.bf16.xpose.msra.mxu1 %v800_v14  ;;  %v781_v20 = vsub.f32 %v2458_v57, %v765_v31  ;;  %v744_v57 = vsub.f32 %v2486_v46, %v728_v28  ;;  %v749_v46 = vsub.f32 %v2527_v27, %v733_v51  ;;  %v1297_v31 = vpop.permute.xlu1 %1296 }
  0xac   :  { %1957 = vmatprep.subr.bf16.mxu0 %v2427_v23  ;;  %1989 = vmatprep.subr.bf16.mxu1 %v799_v3 }
  0xad   :  { %v797_v19 = vpack.c.bf16 %v782_v24, %v781_v20  ;;  %v758_v44 = vpack.c.bf16 %v744_v57, %v743_v43  ;;  %v1292_v24 = vpop.permute.xlu0 %1291 }
  0xaf   :  { %v1302_v28 = vpop.permute.xlu1 %1301 }
  0xb3   :  { %1958 = vmatpush3.bf16.xpose.msra.mxu0 %v2427_v23  ;;  %1990 = vmatpush3.bf16.xpose.msra.mxu1 %v799_v3  ;;  %v729_v23 = vunpack.c.l.bf16 %v2506_v11  ;;  %v1312_v57 = vpop.permute.xlu1 %1311 }
  0xb4   :  { %1959 = vmatprep.subr.bf16.mxu0 %v2447_v45  ;;  %1991 = vmatprep.subr.bf16.mxu1 %v798_v47 }
  0xbb   :  { %1960 = vmatpush3.bf16.xpose.msra.mxu0 %v2447_v45  ;;  %1992 = vmatpush3.bf16.xpose.msra.mxu1 %v798_v47  ;;  %v745_v45 = vsub.f32 %v2497_v39, %v729_v23  ;;  %v750_v39 = vsub.f32 %v2530_v50, %v734_v13  ;;  %v1307_v23 = vpop.permute.xlu0 %1306 }
  0xbc   :  { %1961 = vmatprep.subr.bf16.mxu0 %v2467_v62  ;;  %1993 = vmatprep.subr.bf16.mxu1 %v797_v19 }
  0xbd   :  { %v759_v48 = vpack.c.bf16 %v746_v36, %v745_v45  ;;  %v761_v16 = vpack.c.bf16 %v750_v39, %v749_v46  ;;  %v2697_v45 = vld [vmem:[%s200_s25] ss:$0 sm:$0xff]  ;;  %v1322_v46 = vpop.permute.xlu1 %1321 }
  0xc3   :  { %1962 = vmatpush3.bf16.xpose.msra.mxu0 %v2467_v62  ;;  %1994 = vmatpush3.bf16.xpose.msra.mxu1 %v797_v19  ;;  %v747_v62 = vsub.f32 %v2512_v12, %v731_v26  ;;  %v751_v12 = vsub.f32 %v2542_v54, %v735_v58  ;;  %v756_v54 = vsub.f32 %v2577_v5, %v740_v42  ;;  %v1317_v26 = vpop.permute.xlu0 %1316 }
  0xc5   :  { %v760_v2 = vpack.c.bf16 %v748_v38, %v747_v62  ;;  %v1370_v38 = vmul.f32 %v2697_v45, %v1287_v18 }
  0xc7   :  { %v1327_v29 = vpop.permute.xlu0 %1326 }
  0xca   :  { %1964 = vmatmul.mubr.bf16.vlgmr.msra.gmra.mxu0 %v758_v44  ;;  %1996 = vmatmul.mubr.bf16.vlgmr.msra.gmra.mxu1 %v2494_v10  ;;  %v738_v10 = vunpack.c.h.bf16 %v2566_v41 }
  0xcb   :  { %1967 = vmatprep.mubr.bf16.mxu0 %v759_v48  ;;  %1999 = vmatprep.mubr.bf16.mxu1 %v2506_v11  ;;  %v752_v11 = vsub.f32 %v2545_v52, %v736_v22  ;;  %v1372_v48 = vmul.f32 %v2697_v45, %v1297_v31  ;;  %v1337_v18 = vpop.permute.xlu0 %1336 }
  0xcc   :  { %v754_v27 = vsub.f32 %v2560_v55, %v738_v10 }
  0xcd   :  { %v762_v50 = vpack.c.bf16 %v752_v11, %v751_v12 }
  0xce   :  { %v763_v9 = vpack.c.bf16 %v754_v27, %v753_v17  ;;  %v1371_v27 = vmul.f32 %v2697_v45, %v1292_v24 }
  0xd2   :  { %1968 = vmatmul.mubr.bf16.gmra.mxu0 %v760_v2  ;;  %2000 = vmatmul.mubr.bf16.gmra.mxu1 %v2524_v56  ;;  %v755_v56 = vsub.f32 %v2574_v21, %v739_v30 }
  0xd3   :  { %1971 = vmatprep.mubr.bf16.mxu0 %v761_v16  ;;  %2003 = vmatprep.mubr.bf16.mxu1 %v2536_v53  ;;  %v1373_v16 = vmul.f32 %v2697_v45, %v1302_v28 }
  0xd4   :  { %v764_v53 = vpack.c.bf16 %v756_v54, %v755_v56  ;;  %v1376_v54 = vmul.f32 %v2697_v45, %v1317_v26  ;;  %v1377_v26 = vmul.f32 %v2697_v45, %v1322_v46 }
  0xda   :  { %1972 = vmatmul.mubr.bf16.gmra.mxu0 %v762_v50  ;;  %2004 = vmatmul.mubr.bf16.gmra.mxu1 %v2554_v63 }
  0xdb   :  { %1975 = vmatprep.mubr.bf16.mxu0 %v763_v9  ;;  %2007 = vmatprep.mubr.bf16.mxu1 %v2566_v41 }
  0xe2   :  { %1976 = vmatmul.mubr.bf16.gmra.mxu0 %v764_v53  ;;  %2008 = vmatmul.mubr.bf16.gmra.mxu1 %v2588_v7  ;;  %v1332_v53 = vpop.permute.xlu1 %1331 }
 0x10a   :  { %v1837_v52 = vpop.f32.mrf.mxu0  ;;  %v1869_v37 = vpop.f32.mrf.mxu1 }
 0x10c   :  { %v404_v55 = vpop.f32.mrf.mxu0  ;;  %v501_v1 = vpop.f32.mrf.mxu1 }
 0x10e   :  { %v1838_v25 = vpop.f32.mrf.mxu0  ;;  %v1870_v49 = vpop.f32.mrf.mxu1 }
 0x110   :  { %v2649_v6 = vpop.f32.mrf.mxu0  ;;  %v504_v21 = vpop.f32.mrf.mxu1 }
 0x112   :  { %v2651_v63 = vpop.f32.mrf.mxu0  ;;  %v2653_v14 = vpop.f32.mrf.mxu1 }
 0x114   :  { %v2655_v5 = vpop.f32.mrf.mxu0  ;;  %v2657_v41 = vpop.f32.mrf.mxu1 }
 0x116   :  { %v2659_v60 = vpop.f32.mrf.mxu0  ;;  %v2661_v7 = vpop.f32.mrf.mxu1 }
 0x118   :  { %v2663_v32 = vpop.f32.mrf.mxu0  ;;  %v2665_v34 = vpop.f32.mrf.mxu1 }
 0x11a   :  { %v2667_v59 = vpop.f32.mrf.mxu0  ;;  %v2669_v61 = vpop.f32.mrf.mxu1 }
 0x11c   :  { %v2671_v3 = vpop.f32.mrf.mxu0  ;;  %v2673_v8 = vpop.f32.mrf.mxu1 }
 0x11e   :  { %v2675_v33 = vpop.f32.mrf.mxu0  ;;  %v2677_v15 = vpop.f32.mrf.mxu1 }
 0x120   :  { %v2679_v47 = vpop.f32.mrf.mxu0  ;;  %v2681_v0 = vpop.f32.mrf.mxu1 }
 0x122   :  { %v2683_v20 = vpop.f32.mrf.mxu0  ;;  %v2685_v19 = vpop.f32.mrf.mxu1 }
 0x124   :  { %v2687_v35 = vpop.f32.mrf.mxu0  ;;  %v2689_v4 = vpop.f32.mrf.mxu1 }
 0x126   :  { %v2691_v43 = vpop.f32.mrf.mxu0  ;;  %v2699_v36 = vpop.f32.mrf.mxu1 }
 0x128   :  { %v2701_v44 = vpop.f32.mrf.mxu0  ;;  %v2709_v13 = vpop.f32.mrf.mxu1 }
 0x14a   :  { %v1901_v40 = vpop.f32.mrf.mxu0  ;;  %v2718_v58 = vpop.f32.mrf.mxu1 }
 0x14b   :  { %v607_v51 = vadd.f32 %v1901_v40, %v1869_v37 }
 0x14c   :  { %v598_v62 = vpop.f32.mrf.mxu0  ;;  %v2723_v9 = vpop.f32.mrf.mxu1 }
 0x14d   :  { %v663_v39 = vadd.f32 %v1837_v52, %v607_v51  ;;  %v599_v2 = vadd.f32 %v598_v62, %v501_v1  ;;  %v1342_v51 = vpop.permute.xlu1 %1341 }
 0x14e   :  { %v1902_v22 = vpop.f32.mrf.mxu0  ;;  %v2733_v24 = vpop.f32.mrf.mxu1 }
 0x14f   :  { %v1388_v10 = vmul.f32 %v1372_v48, %v663_v39  ;;  %v661_v12 = vadd.f32 %v599_v2, %v404_v55  ;;  %v610_v11 = vadd.f32 %v1902_v22, %v1870_v49  ;;  %v1374_v49 = vmul.f32 %v2697_v45, %v1307_v23 }
 0x150   :  { %v601_v17 = vpop.f32.mrf.mxu0  ;;  %v1375_v48 = vmul.f32 %v2697_v45, %v1312_v57  ;;  %v1380_v39 = vmul.f32 %v2697_v45, %v1337_v18 }
 0x151   :  { %1404 = vst [vmem:[%s2716_s0 + $0x10] sm:$0xff] %v1388_v10  ;;  %v1386_v50 = vmul.f32 %v1370_v38, %v661_v12  ;;  %v664_v30 = vadd.f32 %v1838_v25, %v610_v11  ;;  %v602_v42 = vadd.f32 %v601_v17, %v504_v21  ;;  %v2743_v38 = vpop.f32.mrf.mxu1  ;;  %v1381_v17 = vmul.f32 %v2697_v45, %v1342_v51 }
 0x152   :  { %v1905_v56 = vpop.f32.mrf.mxu0 }
 0x153   :  { %1402 = vst [vmem:[%s2716_s0] sm:$0xff] %v1386_v50  ;;  %v1389_v52 = vmul.f32 %v1373_v16, %v664_v30  ;;  %v662_v37 = vadd.f32 %v602_v42, %v2649_v6  ;;  %v623_v55 = vadd.f32 %v1905_v56, %v2653_v14  ;;  %v2749_v16 = vpop.f32.mrf.mxu1 }
 0x154   :  { %v614_v1 = vpop.f32.mrf.mxu0 }
 0x155   :  { %1405 = vst [vmem:[%s2716_s0 + $0x18] sm:$0xff] %v1389_v52  ;;  %v1387_v25 = vmul.f32 %v1371_v27, %v662_v37  ;;  %v667_v21 = vadd.f32 %v2651_v63, %v623_v55  ;;  %v615_v31 = vadd.f32 %v614_v1, %v2657_v41  ;;  %v1352_v27 = vpop.permute.xlu1 %1351  ;;  %v2759_v42 = vpop.f32.mrf.mxu1 }
 0x156   :  { %v1906_v28 = vpop.f32.mrf.mxu0 }
 0x157   :  { %1403 = vst [vmem:[%s2716_s0 + $0x8] sm:$0xff] %v1387_v25  ;;  %v1392_v6 = vmul.f32 %v1376_v54, %v667_v21  ;;  %v665_v14 = vadd.f32 %v615_v31, %v2655_v5  ;;  %v626_v23 = vadd.f32 %v1906_v28, %v2661_v7  ;;  %v1347_v5 = vpop.permute.xlu0 %1346 }
 0x158   :  { %v617_v40 = vpop.f32.mrf.mxu0 }
 0x159   :  { %1408 = vst [vmem:[%s2716_s0 + $0x30] sm:$0xff] %v1392_v6  ;;  %v1390_v63 = vmul.f32 %v1374_v49, %v665_v14  ;;  %v668_v41 = vadd.f32 %v2659_v60, %v626_v23  ;;  %v618_v62 = vadd.f32 %v617_v40, %v2665_v34  ;;  %v1378_v60 = vmul.f32 %v2697_v45, %v1327_v29  ;;  %v2769_v49 = vpop.f32.mrf.mxu1  ;;  %v1362_v25 = vpop.permute.xlu1 %1361 }
 0x15a   :  { %v1909_v46 = vpop.f32.mrf.mxu0  ;;  %v1379_v29 = vmul.f32 %v2697_v45, %v1332_v53  ;;  %v1382_v53 = vmul.f32 %v2697_v45, %v1347_v5  ;;  %v1385_v31 = vmul.f32 %v2697_v45, %v1362_v25 }
 0x15b   :  { %1406 = vst [vmem:[%s2716_s0 + $0x20] sm:$0xff] %v1390_v63  ;;  %v1393_v7 = vmul.f32 %v1377_v26, %v668_v41  ;;  %v666_v2 = vadd.f32 %v618_v62, %v2663_v32  ;;  %v639_v57 = vadd.f32 %v1909_v46, %v2669_v61  ;;  %v1357_v54 = vpop.permute.xlu0 %1356  ;;  %v2779_v6 = vpop.f32.mrf.mxu1 }
 0x15c   :  { %v630_v22 = vpop.f32.mrf.mxu0  ;;  %v1384_v37 = vmul.f32 %v2697_v45, %v1357_v54 }
 0x15d   :  { %1409 = vst [vmem:[%s2716_s0 + $0x38] sm:$0xff] %v1393_v7  ;;  %v1391_v34 = vmul.f32 %v1375_v48, %v666_v2  ;;  %v671_v10 = vadd.f32 %v2667_v59, %v639_v57  ;;  %v631_v12 = vadd.f32 %v630_v22, %v2673_v8  ;;  %v2787_v51 = vpop.f32.mrf.mxu1  ;;  %v2809_v22 = vld [vmem:[%s213_s28] ss:$0 sm:$0xff] }
 0x15e   :  { %v1910_v11 = vpop.f32.mrf.mxu0 }
 0x15f   :  { %1407 = vst [vmem:[%s2716_s0 + $0x28] sm:$0xff] %v1391_v34  ;;  %v1396_v32 = vmul.f32 %v1380_v39, %v671_v10  ;;  %v669_v61 = vadd.f32 %v631_v12, %v2671_v3  ;;  %v642_v50 = vadd.f32 %v1910_v11, %v2677_v15 }
 0x160   :  { %v633_v30 = vpop.f32.mrf.mxu0 }
 0x161   :  { %1412 = vst [vmem:[%s2716_s0 + $0x50] sm:$0xff] %v1396_v32  ;;  %v1394_v59 = vmul.f32 %v1378_v60, %v669_v61  ;;  %v672_v8 = vadd.f32 %v2675_v33, %v642_v50  ;;  %v634_v56 = vadd.f32 %v633_v30, %v2681_v0 }
 0x162   :  { %v1913_v52 = vpop.f32.mrf.mxu0 }
 0x163   :  { %1410 = vst [vmem:[%s2716_s0 + $0x40] sm:$0xff] %v1394_v59  ;;  %v1397_v3 = vmul.f32 %v1381_v17, %v672_v8  ;;  %v670_v15 = vadd.f32 %v634_v56, %v2679_v47  ;;  %v655_v55 = vadd.f32 %v1913_v52, %v2685_v19 }
 0x164   :  { %v646_v1 = vpop.f32.mrf.mxu0 }
 0x165   :  { %1413 = vst [vmem:[%s2716_s0 + $0x58] sm:$0xff] %v1397_v3  ;;  %v1395_v33 = vmul.f32 %v1379_v29, %v670_v15  ;;  %v675_v0 = vadd.f32 %v2683_v20, %v655_v55  ;;  %v647_v18 = vadd.f32 %v646_v1, %v2689_v4  ;;  %v1383_v20 = vmul.f32 %v2697_v45, %v1352_v27  ;;  %v1454_v45 = vpop.permute.xlu0 %1453 }
 0x166   :  { %v1914_v21 = vpop.f32.mrf.mxu0  ;;  %v1537_v29 = vmul.f32 %v2809_v22, %v1454_v45 }
 0x167   :  { %1411 = vst [vmem:[%s2716_s0 + $0x48] sm:$0xff] %v1395_v33  ;;  %v1400_v47 = vmul.f32 %v1384_v37, %v675_v0  ;;  %v673_v19 = vadd.f32 %v647_v18, %v2687_v35  ;;  %v658_v28 = vadd.f32 %v1914_v21, %v2699_v36  ;;  %v2791_v36 = vpop.f32.mrf.mxu1 }
 0x168   :  { %v649_v26 = vpop.f32.mrf.mxu0 }
 0x169   :  { %1416 = vst [vmem:[%s2716_s0 + $0x70] sm:$0xff] %v1400_v47  ;;  %v1398_v14 = vmul.f32 %v1382_v53, %v673_v19  ;;  %v676_v4 = vadd.f32 %v2691_v43, %v658_v28  ;;  %v650_v23 = vadd.f32 %v649_v26, %v2709_v13  ;;  %v2793_v63 = vpop.f32.mrf.mxu1  ;;  %v1459_v43 = vpop.permute.xlu1 %1458 }
 0x16a   :  { %v1464_v13 = vpop.permute.xlu0 %1463  ;;  %v1538_v33 = vmul.f32 %v2809_v22, %v1459_v43 }
 0x16b   :  { %1414 = vst [vmem:[%s2716_s0 + $0x60] sm:$0xff] %v1398_v14  ;;  %v1401_v40 = vmul.f32 %v1385_v31, %v676_v4  ;;  %v674_v48 = vadd.f32 %v650_v23, %v2701_v44  ;;  %v2795_v41 = vpop.f32.mrf.mxu1  ;;  %v1539_v17 = vmul.f32 %v2809_v22, %v1464_v13 }
 0x16d   :  { %1417 = vst [vmem:[%s2716_s0 + $0x78] sm:$0xff] %v1401_v40  ;;  %v1399_v35 = vmul.f32 %v1383_v20, %v674_v48  ;;  %v2797_v62 = vpop.f32.mrf.mxu1  ;;  %v1469_v44 = vpop.permute.xlu1 %1468 }
 0x16e   :  { %v1474_v39 = vpop.permute.xlu0 %1473 }
 0x16f   :  { %1415 = vst [vmem:[%s2716_s0 + $0x68] sm:$0xff] %v1399_v35  ;;  %v2799_v46 = vpop.f32.mrf.mxu1  ;;  %v1541_v4 = vmul.f32 %v2809_v22, %v1474_v39 }
 0x171   :  { %v2801_v5 = vpop.f32.mrf.mxu1  ;;  %v1479_v7 = vpop.permute.xlu1 %1478 }
 0x172   :  { %v1484_v57 = vpop.permute.xlu0 %1483  ;;  %v1542_v39 = vmul.f32 %v2809_v22, %v1479_v7 }
 0x173   :  { %v2807_v2 = vpop.f32.mrf.mxu1  ;;  %v1543_v47 = vmul.f32 %v2809_v22, %v1484_v57 }
 0x175   :  { %v1489_v27 = vpop.permute.xlu1 %1488 }
 0x176   :  { %v1494_v59 = vpop.permute.xlu0 %1493  ;;  %v1544_v45 = vmul.f32 %v2809_v22, %v1489_v27 }
 0x177   :  { %v1545_v7 = vmul.f32 %v2809_v22, %v1494_v59 }
 0x179   :  { %v1499_v0 = vpop.permute.xlu1 %1498 }
 0x17a   :  { %v1504_v19 = vpop.permute.xlu0 %1503 }
 0x17b   :  { %v1547_v27 = vmul.f32 %v2809_v22, %v1504_v19 }
 0x17d   :  { %v1509_v43 = vpop.permute.xlu1 %1508 }
 0x18a   :  { %v1965_v60 = vpop.f32.mrf.mxu0  ;;  %v1997_v34 = vpop.f32.mrf.mxu1 }
 0x18b   :  { %v1042_v10 = vadd.f32 %v1997_v34, %v1965_v60  ;;  %v1514_v34 = vpop.permute.xlu0 %1513 }
 0x18c   :  { %v936_v12 = vpop.f32.mrf.mxu0  ;;  %v1033_v11 = vpop.f32.mrf.mxu1 }
 0x18d   :  { %v1098_v32 = vadd.f32 %v2718_v58, %v1042_v10  ;;  %v1034_v61 = vadd.f32 %v1033_v11, %v936_v12  ;;  %v1540_v58 = vmul.f32 %v2809_v22, %v1469_v44 }
 0x18e   :  { %v1966_v50 = vpop.f32.mrf.mxu0  ;;  %v1998_v30 = vpop.f32.mrf.mxu1 }
 0x18f   :  { %v1555_v8 = vmul.f32 %v1539_v17, %v1098_v32  ;;  %v1096_v56 = vadd.f32 %v1034_v61, %v2723_v9  ;;  %v1045_v54 = vadd.f32 %v1998_v30, %v1966_v50 }
 0x190   :  { %v939_v52 = vpop.f32.mrf.mxu0  ;;  %v1036_v37 = vpop.f32.mrf.mxu1 }
 0x191   :  { %1571 = vst [vmem:[%s2817_s1 + $0x10] sm:$0xff] %v1555_v8  ;;  %v1553_v3 = vmul.f32 %v1537_v29, %v1096_v56  ;;  %v1099_v15 = vadd.f32 %v2733_v24, %v1045_v54  ;;  %v1037_v55 = vadd.f32 %v1036_v37, %v939_v52  ;;  %v1519_v29 = vpop.permute.xlu1 %1518  ;;  %v1548_v37 = vmul.f32 %v2809_v22, %v1509_v43 }
 0x192   :  { %v1969_v1 = vpop.f32.mrf.mxu0  ;;  %v2001_v53 = vpop.f32.mrf.mxu1 }
 0x193   :  { %1569 = vst [vmem:[%s2817_s1] sm:$0xff] %v1553_v3  ;;  %v1556_v18 = vmul.f32 %v1540_v58, %v1099_v15  ;;  %v1097_v9 = vadd.f32 %v1037_v55, %v2743_v38  ;;  %v1058_v25 = vadd.f32 %v2001_v53, %v1969_v1  ;;  %v1524_v58 = vpop.permute.xlu0 %1523  ;;  %v1546_v1 = vmul.f32 %v2809_v22, %v1499_v0 }
 0x194   :  { %v952_v21 = vpop.f32.mrf.mxu0  ;;  %v1049_v31 = vpop.f32.mrf.mxu1 }
 0x195   :  { %1572 = vst [vmem:[%s2817_s1 + $0x18] sm:$0xff] %v1556_v18  ;;  %v1554_v24 = vmul.f32 %v1538_v33, %v1097_v9  ;;  %v1102_v28 = vadd.f32 %v2749_v16, %v1058_v25  ;;  %v1050_v26 = vadd.f32 %v1049_v31, %v952_v21  ;;  %v1529_v25 = vpop.permute.xlu1 %1528  ;;  %v1551_v21 = vmul.f32 %v2809_v22, %v1524_v58 }
 0x196   :  { %v1970_v20 = vpop.f32.mrf.mxu0  ;;  %v2002_v14 = vpop.f32.mrf.mxu1 }
 0x197   :  { %1570 = vst [vmem:[%s2817_s1 + $0x8] sm:$0xff] %v1554_v24  ;;  %v1559_v23 = vmul.f32 %v1543_v47, %v1102_v28  ;;  %v1100_v38 = vadd.f32 %v1050_v26, %v2759_v42  ;;  %v1061_v40 = vadd.f32 %v2002_v14, %v1970_v20  ;;  %v1549_v24 = vmul.f32 %v2809_v22, %v1514_v34 }
 0x198   :  { %v955_v48 = vpop.f32.mrf.mxu0  ;;  %v1052_v35 = vpop.f32.mrf.mxu1 }
 0x199   :  { %1575 = vst [vmem:[%s2817_s1 + $0x30] sm:$0xff] %v1559_v23  ;;  %v1557_v13 = vmul.f32 %v1541_v4, %v1100_v38  ;;  %v1103_v16 = vadd.f32 %v2769_v49, %v1061_v40  ;;  %v1053_v44 = vadd.f32 %v1052_v35, %v955_v48  ;;  %v1552_v4 = vmul.f32 %v2809_v22, %v1529_v25 }
 0x19a   :  { %v1973_v57 = vpop.f32.mrf.mxu0  ;;  %v2005_v60 = vpop.f32.mrf.mxu1  ;;  %v1550_v40 = vmul.f32 %v2809_v22, %v1519_v29 }
 0x19b   :  { %1573 = vst [vmem:[%s2817_s1 + $0x20] sm:$0xff] %v1557_v13  ;;  %v1560_v42 = vmul.f32 %v1544_v45, %v1103_v16  ;;  %v1101_v10 = vadd.f32 %v1053_v44, %v2779_v6  ;;  %v1074_v12 = vadd.f32 %v2005_v60, %v1973_v57 }
 0x19c   :  { %v968_v11 = vpop.f32.mrf.mxu0  ;;  %v1065_v17 = vpop.f32.mrf.mxu1 }
 0x19d   :  { %1576 = vst [vmem:[%s2817_s1 + $0x38] sm:$0xff] %v1560_v42  ;;  %v1558_v32 = vmul.f32 %v1542_v39, %v1101_v10  ;;  %v1106_v49 = vadd.f32 %v2787_v51, %v1074_v12  ;;  %v1066_v61 = vadd.f32 %v1065_v17, %v968_v11 }
 0x19e   :  { %v1974_v50 = vpop.f32.mrf.mxu0  ;;  %v2006_v30 = vpop.f32.mrf.mxu1 }
 0x19f   :  { %1574 = vst [vmem:[%s2817_s1 + $0x28] sm:$0xff] %v1558_v32  ;;  %v1563_v8 = vmul.f32 %v1547_v27, %v1106_v49  ;;  %v1104_v6 = vadd.f32 %v1066_v61, %v2791_v36  ;;  %v1077_v56 = vadd.f32 %v2006_v30, %v1974_v50 }
 0x1a0   :  { %v971_v54 = vpop.f32.mrf.mxu0  ;;  %v1068_v52 = vpop.f32.mrf.mxu1 }
 0x1a1   :  { %1579 = vst [vmem:[%s2817_s1 + $0x50] sm:$0xff] %v1563_v8  ;;  %v1561_v51 = vmul.f32 %v1545_v7, %v1104_v6  ;;  %v1107_v3 = vadd.f32 %v2793_v63, %v1077_v56  ;;  %v1069_v15 = vadd.f32 %v1068_v52, %v971_v54 }
 0x1a2   :  { %v1977_v55 = vpop.f32.mrf.mxu0  ;;  %v2009_v59 = vpop.f32.mrf.mxu1 }
 0x1a3   :  { %1577 = vst [vmem:[%s2817_s1 + $0x40] sm:$0xff] %v1561_v51  ;;  %v1564_v53 = vmul.f32 %v1548_v37, %v1107_v3  ;;  %v1105_v36 = vadd.f32 %v1069_v15, %v2795_v41  ;;  %v1090_v33 = vadd.f32 %v2009_v59, %v1977_v55 }
 0x1a4   :  { %v984_v18 = vpop.f32.mrf.mxu0  ;;  %v1081_v9 = vpop.f32.mrf.mxu1 }
 0x1a5   :  { %1580 = vst [vmem:[%s2817_s1 + $0x58] sm:$0xff] %v1564_v53  ;;  %v1562_v31 = vmul.f32 %v1546_v1, %v1105_v36  ;;  %v1110_v63 = vadd.f32 %v2797_v62, %v1090_v33  ;;  %v1082_v47 = vadd.f32 %v1081_v9, %v984_v18 }
 0x1a6   :  { %v1978_v19 = vpop.f32.mrf.mxu0  ;;  %v2010_v0 = vpop.f32.mrf.mxu1 }
 0x1a7   :  { %1578 = vst [vmem:[%s2817_s1 + $0x48] sm:$0xff] %v1562_v31  ;;  %v1567_v41 = vmul.f32 %v1551_v21, %v1110_v63  ;;  %v1108_v28 = vadd.f32 %v1082_v47, %v2799_v46  ;;  %v1093_v26 = vadd.f32 %v2010_v0, %v1978_v19 }
 0x1a8   :  { %v987_v20 = vpop.f32.mrf.mxu0  ;;  %v1084_v14 = vpop.f32.mrf.mxu1 }
 0x1a9   :  { %1583 = vst [vmem:[%s2817_s1 + $0x70] sm:$0xff] %v1567_v41  ;;  %v1565_v23 = vmul.f32 %v1549_v24, %v1108_v28  ;;  %v1111_v62 = vadd.f32 %v2801_v5, %v1093_v26  ;;  %v1085_v38 = vadd.f32 %v1084_v14, %v987_v20 }
 0x1ab   :  { %1581 = vst [vmem:[%s2817_s1 + $0x60] sm:$0xff] %v1565_v23  ;;  %v1568_v48 = vmul.f32 %v1552_v4, %v1111_v62  ;;  %v1109_v35 = vadd.f32 %v1085_v38, %v2807_v2 }
 0x1ad   :  { %1584 = vst [vmem:[%s2817_s1 + $0x78] sm:$0xff] %v1568_v48  ;;  %v1566_v45 = vmul.f32 %v1550_v40, %v1109_v35 }
 0x1af   :  { %1582 = vst [vmem:[%s2817_s1 + $0x68] sm:$0xff] %v1566_v45 }

// kernel: neg.5
= control target key start
LH: loop header
LB: loop body
LE: loop exit
PB: predicated region body
PF: predicated region fallthrough
CT: control target
= control target key end

     0   :  { %s24_s0 = inlined_call_operand.vmem [shape: f32[120], index: 0, kind: input, shape index: {}]   ;;  %s25_s1 = inlined_call_operand.vmem [shape: f32[120], index: 1, kind: output, shape index: {}]  }
   0x1   :  { %v2_v0 = vld [vmem:[%s24_s0] sm:$0x1] }
   0x2   :  { %v5_v1 = vxor.u32 2147483648, %v2_v0 }
   0x4   :  { %7 = vst [vmem:[%s25_s1] sm:$0x1] %v5_v1 }

// kernel: ekd_forward.3
= control target key start
LH: loop header
LB: loop body
LE: loop exit
PB: predicated region body
PF: predicated region fallthrough
CT: control target
= control target key end

     0   :  { %s304_s0 = inlined_call_operand.vmem [shape: f32[6], index: 0, kind: input, shape index: {}]   ;;  %s305_s2 = inlined_call_operand.vmem [shape: f32[8,128], index: 2, kind: input, shape index: {}]   ;;  %s306_s3 = inlined_call_operand.vmem [shape: f32[8,128], index: 3, kind: input, shape index: {}]   ;;  %s307_s4 = inlined_call_operand.vmem [shape: f32[8,128], index: 4, kind: input, shape index: {}]   ;;  %s308_s5 = inlined_call_operand.vmem [shape: f32[8,128], index: 5, kind: output, shape index: {}]   ;;  %s309_s1 = inlined_call_operand.vmem [shape: f32[6], index: 1, kind: input, shape index: {}]  }
   0x1   :  { %s10_s20 = sshll.u32 %s304_s0, 4  ;;  %s14_s23 = sshll.u32 %s309_s1, 4  ;;  %s11_s20 = int_to_ptr.vmem [resolvable:$true] %s10_s20  ;;  %s15_s23 = int_to_ptr.vmem [resolvable:$true] %s14_s23 }
   0x2   :  { %s228_s24 = scalar_lea.vmem %s11_s20, 16  ;;  %p233_p1 = scmp.lt.s32.totalorder %s11_s20, %s11_s20 }
   0x3   :  { %p229_p0 = scmp.ne.s32.totalorder %s11_s20, %s228_s24  ;;  %p234_p2 = scmp.lt.s32.totalorder %s228_s24, %s228_s24 }
   0x5   :  { %p235_p3 = por %p234_p2, %p233_p1 }
   0x7   :  { %p236_p4 = pnand %p235_p3, %p229_p0 }
   0x9   :  { %239 = shalt.err (!%p236_p4)  }
   0xa   :  { %s254_s25 = smov [#allocation4]   ;;  %s240_s26 = scalar_lea.vmem %s15_s23, 16 }
   0xb   :  { %13 = dma.vmem_to_smem %s11_s20, 16, %s254_s25, [#allocation3] }
   0xc   :  { %p241_p5 = scmp.ne.s32.totalorder %s15_s23, %s240_s26  ;;  %p245_p6 = scmp.lt.s32.totalorder %s15_s23, %s15_s23 }
   0xd   :  { %p246_p7 = scmp.lt.s32.totalorder %s240_s26, %s240_s26 }
   0xf   :  { %p247_p8 = por %p246_p7, %p245_p6 }
  0x11   :  { %p248_p9 = pnand %p247_p8, %p241_p5 }
  0x13   :  { %251 = shalt.err (!%p248_p9)  }
  0x14   :  { %s255_s0 = smov [#allocation5]  }
  0x15   :  { %17 = dma.vmem_to_smem %s15_s23, 16, %s255_s0, [#allocation3] }
  0x16   :  { %252 = dma.done.wait [#allocation3], 32 }
  0x17   :  { %253 = vsyncadd [#allocation3], 4294967264 }
  0x18   :  { %19 = sfence }
  0x19   :  { %s85_s1 = sld [smem:[#allocation4]]  ;;  %v82_v0 = vld [vmem:[%s305_s2] sm:$0xff] }
  0x1a   :  { %s91_s27 = sld [smem:[#allocation5]]  ;;  %v83_v1 = vld [vmem:[%s306_s3] sm:$0xff] }
  0x1b   :  { %s192_s28 = sld [smem:[#allocation4 + $0x1]]  ;;  %v84_v61 = vld [vmem:[%s307_s4] sm:$0xff] }
  0x1c   :  { %s193_s29 = sld [smem:[#allocation5 + $0x1]] }
  0x1d   :  { %s194_s7 = sld [smem:[#allocation4 + $0x2]] }
  0x1e   :  { %s195_s10 = sld [smem:[#allocation5 + $0x2]] }
  0x1f   :  { %v86_v2 = vstv %s85_s1  ;;  %s196_s11 = sld [smem:[#allocation4 + $0x3]] }
  0x20   :  { %v87_v3 = vsub.f32 %v82_v0, %v86_v2  ;;  %v92_v4 = vstv %s91_s27  ;;  %s197_s12 = sld [smem:[#allocation5 + $0x3]] }
  0x21   :  { %v93_v5 = vsub.f32 %v83_v1, %v92_v4  ;;  %v98_v6 = vstv %s192_s28  ;;  %s198_s13 = sld [smem:[#allocation4 + $0x4]] }
  0x22   :  { %v88_v7 = vmul.f32 50.0, %v87_v3  ;;  %v99_v8 = vsub.f32 %v82_v0, %v98_v6  ;;  %v104_v9 = vstv %s193_s29  ;;  %s199_s14 = sld [smem:[#allocation5 + $0x4]] }
  0x23   :  { %v94_v10 = vmul.f32 50.0, %v93_v5  ;;  %v105_v11 = vsub.f32 %v83_v1, %v104_v9  ;;  %v110_v12 = vstv %s194_s7  ;;  %s200_s2 = sld [smem:[#allocation4 + $0x5]] }
  0x24   :  { %204 = vtanh.f32 %v88_v7  ;;  %v100_v13 = vmul.f32 50.0, %v99_v8  ;;  %v111_v14 = vsub.f32 %v82_v0, %v110_v12  ;;  %v116_v15 = vstv %s195_s10  ;;  %s201_s3 = sld [smem:[#allocation5 + $0x5]] }
  0x25   :  { %206 = vtanh.f32 %v94_v10  ;;  %v106_v16 = vmul.f32 50.0, %v105_v11  ;;  %v117_v17 = vsub.f32 %v83_v1, %v116_v15  ;;  %v122_v18 = vstv %s196_s11 }
  0x26   :  { %208 = vtanh.f32 %v100_v13  ;;  %v112_v19 = vmul.f32 50.0, %v111_v14  ;;  %v123_v20 = vsub.f32 %v82_v0, %v122_v18  ;;  %v128_v21 = vstv %s197_s12 }
  0x27   :  { %210 = vtanh.f32 %v106_v16  ;;  %v118_v22 = vmul.f32 50.0, %v117_v17  ;;  %v129_v23 = vsub.f32 %v83_v1, %v128_v21  ;;  %v134_v24 = vstv %s198_s13 }
  0x28   :  { %212 = vtanh.f32 %v112_v19  ;;  %v124_v25 = vmul.f32 50.0, %v123_v20  ;;  %v135_v26 = vsub.f32 %v82_v0, %v134_v24  ;;  %v140_v27 = vstv %s199_s14 }
  0x29   :  { %214 = vtanh.f32 %v118_v22  ;;  %v130_v28 = vmul.f32 50.0, %v129_v23  ;;  %v141_v29 = vsub.f32 %v83_v1, %v140_v27  ;;  %v146_v30 = vstv %s200_s2 }
  0x2a   :  { %216 = vtanh.f32 %v124_v25  ;;  %v136_v31 = vmul.f32 50.0, %v135_v26  ;;  %v147_v32 = vsub.f32 %v82_v0, %v146_v30  ;;  %v152_v33 = vstv %s201_s3 }
  0x2b   :  { %218 = vtanh.f32 %v130_v28  ;;  %v142_v34 = vmul.f32 50.0, %v141_v29  ;;  %v153_v35 = vsub.f32 %v83_v1, %v152_v33 }
  0x2c   :  { %220 = vtanh.f32 %v136_v31  ;;  %v148_v36 = vmul.f32 50.0, %v147_v32 }
  0x2d   :  { %222 = vtanh.f32 %v142_v34  ;;  %v154_v37 = vmul.f32 50.0, %v153_v35 }
  0x2e   :  { %224 = vtanh.f32 %v148_v36 }
  0x2f   :  { %226 = vtanh.f32 %v154_v37 }
  0x31   :  { %v205_v38 = vpop.eup %204 }
  0x32   :  { %v207_v39 = vpop.eup %206 }
  0x33   :  { %v209_v40 = vpop.eup %208 }
  0x34   :  { %v211_v41 = vpop.eup %210  ;;  %v102_v42 = vadd.f32 %v209_v40, %v205_v38 }
  0x35   :  { %v213_v43 = vpop.eup %212  ;;  %v108_v44 = vadd.f32 %v211_v41, %v207_v39 }
  0x36   :  { %v215_v45 = vpop.eup %214  ;;  %v114_v46 = vadd.f32 %v213_v43, %v102_v42 }
  0x37   :  { %v217_v47 = vpop.eup %216  ;;  %v120_v48 = vadd.f32 %v215_v45, %v108_v44 }
  0x38   :  { %v219_v49 = vpop.eup %218  ;;  %v126_v50 = vadd.f32 %v217_v47, %v114_v46 }
  0x39   :  { %v221_v51 = vpop.eup %220  ;;  %v132_v52 = vadd.f32 %v219_v49, %v120_v48 }
  0x3a   :  { %v223_v53 = vpop.eup %222  ;;  %v138_v54 = vadd.f32 %v221_v51, %v126_v50 }
  0x3b   :  { %v225_v55 = vpop.eup %224  ;;  %v144_v56 = vadd.f32 %v223_v53, %v132_v52 }
  0x3c   :  { %v227_v57 = vpop.eup %226  ;;  %v150_v58 = vadd.f32 %v225_v55, %v138_v54 }
  0x3d   :  { %v156_v59 = vadd.f32 %v227_v57, %v144_v56 }
  0x3f   :  { %v157_v60 = vsub.f32 %v150_v58, %v156_v59 }
  0x41   :  { %v158_v62 = vmul.f32 0.5, %v157_v60 }
  0x43   :  { %v159_v63 = vmul.f32 %v158_v62, %v84_v61 }
  0x45   :  { %v160_v0 = vmul.f32 %v159_v63, %v158_v62 }
  0x47   :  { %169 = vst [vmem:[%s308_s5] sm:$0xff] %v160_v0 }

</bundles_post_ra>
